<compile_context>
chip_gen: v7x
topology: tpu7x:2x2x1
jax: 0.10.0
libtpu: 0.0.40
codegen_flags: <defaults>
</compile_context>

<pallas_src>
import functools
import itertools
import math

import numpy as np
import jax
import jax.numpy as jnp
from jax import lax
from jax.experimental import pallas as pl
from jax.experimental.pallas import tpu as pltpu

_SQRT2 = math.sqrt(2.0)
_KKP = 64          # padded flattened-cost length (K <= 8  ->  K*K <= 64)
_LHS_ROWS = 16     # LHS sublane rows (bf16 native sublane tile); rows 0/1 = hi/lo
_TN_MAX = 4096     # permutation-lane tile: multiple of 256 (v6e/v7x MXU) and 128 (v5e)


def _round_up(x, k):
    return ((x + k - 1) // k) * k


# ----------------------------------------------------------------------------
# glue: remove_zero_bars (dynamic boolean filtering, done host-side)
# ----------------------------------------------------------------------------
def remove_zero_bars(dgm):
    dgm = np.asarray(dgm)
    return dgm[dgm[:, 0] != dgm[:, 1], :]


@functools.lru_cache(maxsize=None)
def _num_cores():
    # 2 TensorCores only on v7x; on v5e/v6e a size-2 "parallel" axis is pure overhead.
    try:
        kind = jax.devices()[0].device_kind.lower()
    except Exception:
        return 1
    if ("v7" in kind) or ("7x" in kind) or ("tpu7" in kind):
        return 2
    return 1


# ----------------------------------------------------------------------------
# fused Pallas kernel: cost matrix (step 0) + lane-dense min-cost assignment
# ----------------------------------------------------------------------------
def _make_kernel(n, m, K, TN):
    inv_sqrt2 = np.float32(1.0 / _SQRT2)
    KK = K * K

    def kernel(bars_ref, oh_ref, out_ref, lhs_ref, min_ref):
        step = pl.program_id(1)

        @pl.when(step == 0)
        def _build_cost_matrix():
            # Lane e of the LHS holds flattened D[i, j] with e = i*K + j.
            e = lax.broadcasted_iota(jnp.int32, (_LHS_ROWS, _KKP), 1)
            i_idx = jnp.zeros_like(e)
            for k in range(1, K):                       # i = e // K without vector div
                i_idx = i_idx + (e >= k * K).astype(jnp.int32)
            j_idx = e - i_idx * K
            valid = e < KK

            zero = jnp.zeros(e.shape, jnp.float32)
            sb = zero
            sd = zero
            tb = zero
            td = zero
            for k in range(K):                          # K <= 8: unrolled SMEM scalar selects
                sel_i = i_idx == k
                sel_j = j_idx == k
                sb = jnp.where(sel_i, bars_ref[0, k], sb)   # dgm0 births gathered by i
                sd = jnp.where(sel_i, bars_ref[1, k], sd)   # dgm0 deaths gathered by i
                tb = jnp.where(sel_j, bars_ref[2, k], tb)   # dgm1 births gathered by j
                td = jnp.where(sel_j, bars_ref[3, k], td)   # dgm1 deaths gathered by j

            in_ul = jnp.logical_and(i_idx < n, j_idx < m)    # dgm0 <-> dgm1
            in_ur = jnp.logical_and(i_idx < n, j_idx >= m)   # dgm0 <-> diagonal
            in_ll = jnp.logical_and(i_idx >= n, j_idx < m)   # diagonal <-> dgm1
            ur_diag = jnp.logical_and(in_ur, (j_idx - m) == i_idx)
            ll_diag = jnp.logical_and(in_ll, (i_idx - n) == j_idx)

            dul = jnp.sqrt((sb - tb) ** 2 + (sd - td) ** 2)
            sdiag = (sd - sb) * inv_sqrt2
            tdiag = (td - tb) * inv_sqrt2

            # NOTE: masked-max with 0.0 assumes all candidates are >= 0 (L2 distances
            # and death >= birth bars) — same assumption as the persim reference.
            fill1 = jnp.max(jnp.where(jnp.logical_and(in_ul, valid), dul, 0.0))
            fill2 = jnp.maximum(
                fill1,
                jnp.max(jnp.where(jnp.logical_and(ur_diag, valid), sdiag, 0.0)))

            dv = jnp.where(in_ul, dul, 0.0)   # bottom-right (diag <-> diag) stays 0
            dv = jnp.where(in_ur, jnp.where(ur_diag, sdiag, fill1), dv)
            dv = jnp.where(in_ll, jnp.where(ll_diag, tdiag, fill2), dv)
            dv = jnp.where(valid, dv, 0.0)

            # bf16 hi/lo split, fused into a single MXU pass: row 0 = hi, row 1 = lo,
            # remaining rows = 0 (f32 accumulate keeps ~f32 accuracy).
            hi = dv.astype(jnp.bfloat16).astype(jnp.float32)
            lo = dv - hi
            row = lax.broadcasted_iota(jnp.int32, (_LHS_ROWS, _KKP), 0)
            lhs = jnp.where(row == 0, hi, jnp.where(row == 1, lo, 0.0))
            lhs_ref[...] = lhs.astype(jnp.bfloat16)
            min_ref[...] = jnp.full((1, TN), jnp.inf, jnp.float32)

        # Lane-dense per-permutation costs: (_LHS_ROWS, 64) @ (64, TN) -> (_LHS_ROWS, TN)
        # on the MXU; rows 0/1 hold the hi/lo partial costs of TN permutations.
        res = jnp.dot(lhs_ref[...], oh_ref[...], preferred_element_type=jnp.float32)
        costs = res[0:1, :] + res[1:2, :]                       # (1, TN)
        min_ref[...] = jnp.minimum(min_ref[...], costs)         # elementwise, lane-dense

        @pl.when(step == pl.num_programs(1) - 1)
        def _finalize():
            out_ref[0] = jnp.min(min_ref[...], axis=1, keepdims=True)   # single XLU reduce

    return kernel


# ----------------------------------------------------------------------------
# host-side constants (cached, device-resident): bf16 one-hot^T, tiling params
# ----------------------------------------------------------------------------
@functools.lru_cache(maxsize=None)
def _assignment_constants(K, num_cores):
    perms = np.array(list(itertools.permutations(range(K))), dtype=np.int64)  # (K!, K)
    NP = perms.shape[0]

    TN = max(256, min(_TN_MAX, _round_up(-(-NP // num_cores), 256)))
    inner = -(-NP // (num_cores * TN))
    total = num_cores * inner * TN
    if total > NP:                                 # pad columns with copies of perm 0
        perms = np.concatenate([perms, np.tile(perms[:1], (total - NP, 1))], axis=0)

    # onehot^T[e, t] = 1 iff flattened index e = i*K + perms[t, i] for some i.
    flat = np.arange(K)[None, :] * K + perms                       # (total, K)
    onehot_t = np.zeros((_KKP, total), dtype=np.float32)
    onehot_t[flat.reshape(-1), np.repeat(np.arange(total), K)] = 1.0
    onehot_t = jnp.asarray(onehot_t, dtype=jnp.bfloat16)           # bf16 in HBM, no in-kernel cast

    return onehot_t, TN, inner


@functools.lru_cache(maxsize=None)
def _min_assignment_fn(n, m):
    K = n + m
    num_cores = _num_cores()
    onehot_t, TN, inner = _assignment_constants(K, num_cores)
    kernel = _make_kernel(n, m, K, TN)

    call = pl.pallas_call(
        kernel,
        out_shape=jax.ShapeDtypeStruct((num_cores, 1, 1), jnp.float32),
        grid=(num_cores, inner),
        in_specs=[
            pl.BlockSpec(memory_space=pltpu.MemorySpace.SMEM),            # bars (4, 8) f32
            pl.BlockSpec((_KKP, TN), lambda c, i: (0, c * inner + i)),    # onehot^T block
        ],
        out_specs=pl.BlockSpec((1, 1, 1), lambda c, i: (c, 0, 0)),
        scratch_shapes=[
            pltpu.VMEM((_LHS_ROWS, _KKP), jnp.bfloat16),   # flattened cost, rows 0/1 = hi/lo
            pltpu.VMEM((1, TN), jnp.float32),              # lane-dense running min
        ],
        compiler_params=pltpu.CompilerParams(
            dimension_semantics=("parallel", "arbitrary")),
    )

    solve = jax.jit(lambda bars, oh: jnp.min(call(bars, oh)))
    return solve, onehot_t


# ----------------------------------------------------------------------------
# WassersteinLayer.forward equivalent
# ----------------------------------------------------------------------------
def wasserstein_layer(dgm0, dgm1):
    d0 = remove_zero_bars(np.asarray(dgm0)).astype(np.float32)
    d1 = remove_zero_bars(np.asarray(dgm1)).astype(np.float32)
    n, m = d0.shape[0], d1.shape[0]
    if n == 0 and m == 0:
        return jnp.asarray(0.0, jnp.float32)
    if n == 0 or m == 0:
        d = jnp.asarray(d1 if n == 0 else d0, jnp.float32)
        return jnp.sum((d[:, 1] - d[:, 0]) / _SQRT2).astype(jnp.float32)
    K = n + m
    # TODO(synk): exact Hungarian / hera-auction matching for large diagrams has no
    #             clean Pallas equivalent; brute-force permutation search caps n+m.
    assert K <= 8, "brute-force matching demo limited to small diagrams (n + m <= 8)"

    solve, onehot_t = _min_assignment_fn(n, m)
    bars = np.zeros((4, 8), np.float32)
    bars[0, :n] = d0[:, 0]
    bars[1, :n] = d0[:, 1]
    bars[2, :m] = d1[:, 0]
    bars[3, :m] = d1[:, 1]
    return solve(jnp.asarray(bars), onehot_t)


# ----------------------------------------------------------------------------
# pure-numpy reference for a sanity check
# ----------------------------------------------------------------------------
def _reference_wasserstein(dgm0, dgm1):
    d0 = remove_zero_bars(dgm0).astype(np.float64)
    d1 = remove_zero_bars(dgm1).astype(np.float64)
    n, m = d0.shape[0], d1.shape[0]
    K = n + m
    D = np.zeros((K, K))
    D[:n, :m] = np.sqrt(((d0[:, None, :] - d1[None, :, :]) ** 2).sum(-1))
    fill1 = D.max()
    UR = np.full((n, n), fill1)
    np.fill_diagonal(UR, (d0[:, 1] - d0[:, 0]) / _SQRT2)
    D[:n, m:] = UR
    fill2 = D.max()
    UL = np.full((m, m), fill2)
    np.fill_diagonal(UL, (d1[:, 1] - d1[:, 0]) / _SQRT2)
    D[n:, :m] = UL
    perms = np.array(list(itertools.permutations(range(K))), dtype=np.int64)
    costs = D[np.arange(K)[None, :], perms].sum(axis=1)
    return costs.min()


if __name__ == "__main__":
    key = jax.random.PRNGKey(0)
    k0, k1, k2, k3 = jax.random.split(key, 4)

    # diagram 0: 4 proper bars + 1 zero-length bar (to be removed)
    b0 = jax.random.uniform(k0, (4, 1), jnp.float32)
    l0 = jax.random.uniform(k1, (4, 1), jnp.float32)
    dgm0 = jnp.concatenate([b0, b0 + l0], axis=1)
    dgm0 = jnp.concatenate([dgm0, jnp.array([[0.3, 0.3]], jnp.float32)], axis=0)  # (5, 2)

    # diagram 1: 4 proper bars + 1 zero-length bar (to be removed)
    b1 = jax.random.uniform(k2, (4, 1), jnp.float32)
    l1 = jax.random.uniform(k3, (4, 1), jnp.float32)
    dgm1 = jnp.concatenate([b1, b1 + l1], axis=1)
    dgm1 = jnp.concatenate([dgm1, jnp.array([[0.7, 0.7]], jnp.float32)], axis=0)  # (5, 2)

    dist = wasserstein_layer(dgm0, dgm1)
    dist = jax.block_until_ready(dist)

    ref = _reference_wasserstein(np.asarray(dgm0), np.asarray(dgm1))
    assert np.allclose(float(dist), ref, rtol=1e-4, atol=1e-4), (float(dist), ref)

    print("KERNEL_OK")
</pallas_src>

<mosaic_0001>
module attributes {stable_mosaic.version = 11 : i64} {
  func.func @kernel(%arg0: i32, %arg1: i32, %arg2: memref<4x8xf32, #tpu.memory_space<smem>>, %arg3: memref<64x4096xbf16, #tpu.memory_space<vmem>>, %arg4: memref<1x1x1xf32, #tpu.memory_space<vmem>>, %arg5: memref<16x64xbf16, #tpu.memory_space<vmem>>, %arg6: memref<1x4096xf32, #tpu.memory_space<vmem>>) attributes {dimension_semantics = [#tpu.dimension_semantics<parallel>, #tpu.dimension_semantics<arbitrary>], iteration_bounds = array<i64: 1, 10>, scalar_prefetch = 0 : i64, scratch_operands = 2 : i64, tpu.core_type = #tpu.core_type<tc>, window_params = [{transform_indices = @transform_0, window_bounds = array<i64: 4, 8>}, {transform_indices = @transform_1, window_bounds = array<i64: 64, 4096>}, {transform_indices = @transform_2, window_bounds = array<i64: 1, 1, 1>}]} {
    %c0_i32 = arith.constant 0 : i32
    %0 = arith.cmpi eq, %arg1, %c0_i32 : i32
    %1 = arith.extui %0 : i1 to i32
    %c0_i32_0 = arith.constant 0 : i32
    %2 = arith.cmpi ne, %1, %c0_i32_0 : i32
    scf.if %2 {
      %15 = tpu.iota {dimensions = array<i32: 1>} : vector<16x64xi32>
      %c0_i32_9 = arith.constant 0 : i32
      %16 = vector.broadcast %c0_i32_9 : i32 to vector<16x64xi32>
      %c8_i32 = arith.constant 8 : i32
      %17 = vector.broadcast %c8_i32 : i32 to vector<16x64xi32>
      %18 = arith.cmpi sge, %15, %17 : vector<16x64xi32>
      %19 = arith.extui %18 : vector<16x64xi1> to vector<16x64xi32>
      %20 = arith.addi %16, %19 : vector<16x64xi32>
      %c16_i32 = arith.constant 16 : i32
      %21 = vector.broadcast %c16_i32 : i32 to vector<16x64xi32>
      %22 = arith.cmpi sge, %15, %21 : vector<16x64xi32>
      %23 = arith.extui %22 : vector<16x64xi1> to vector<16x64xi32>
      %24 = arith.addi %20, %23 : vector<16x64xi32>
      %c24_i32 = arith.constant 24 : i32
      %25 = vector.broadcast %c24_i32 : i32 to vector<16x64xi32>
      %26 = arith.cmpi sge, %15, %25 : vector<16x64xi32>
      %27 = arith.extui %26 : vector<16x64xi1> to vector<16x64xi32>
      %28 = arith.addi %24, %27 : vector<16x64xi32>
      %c32_i32 = arith.constant 32 : i32
      %29 = vector.broadcast %c32_i32 : i32 to vector<16x64xi32>
      %30 = arith.cmpi sge, %15, %29 : vector<16x64xi32>
      %31 = arith.extui %30 : vector<16x64xi1> to vector<16x64xi32>
      %32 = arith.addi %28, %31 : vector<16x64xi32>
      %c40_i32 = arith.constant 40 : i32
      %33 = vector.broadcast %c40_i32 : i32 to vector<16x64xi32>
      %34 = arith.cmpi sge, %15, %33 : vector<16x64xi32>
      %35 = arith.extui %34 : vector<16x64xi1> to vector<16x64xi32>
      %36 = arith.addi %32, %35 : vector<16x64xi32>
      %c48_i32 = arith.constant 48 : i32
      %37 = vector.broadcast %c48_i32 : i32 to vector<16x64xi32>
      %38 = arith.cmpi sge, %15, %37 : vector<16x64xi32>
      %39 = arith.extui %38 : vector<16x64xi1> to vector<16x64xi32>
      %40 = arith.addi %36, %39 : vector<16x64xi32>
      %c56_i32 = arith.constant 56 : i32
      %41 = vector.broadcast %c56_i32 : i32 to vector<16x64xi32>
      %42 = arith.cmpi sge, %15, %41 : vector<16x64xi32>
      %43 = arith.extui %42 : vector<16x64xi1> to vector<16x64xi32>
      %44 = arith.addi %40, %43 : vector<16x64xi32>
      %c8_i32_10 = arith.constant 8 : i32
      %45 = vector.broadcast %c8_i32_10 : i32 to vector<16x64xi32>
      %46 = arith.muli %44, %45 : vector<16x64xi32>
      %47 = arith.subi %15, %46 : vector<16x64xi32>
      %c64_i32 = arith.constant 64 : i32
      %48 = vector.broadcast %c64_i32 : i32 to vector<16x64xi32>
      %49 = arith.cmpi slt, %15, %48 : vector<16x64xi32>
      %cst_11 = arith.constant 0.000000e+00 : f32
      %50 = vector.broadcast %cst_11 : f32 to vector<16x64xf32>
      %c0_i32_12 = arith.constant 0 : i32
      %51 = vector.broadcast %c0_i32_12 : i32 to vector<16x64xi32>
      %52 = arith.cmpi eq, %44, %51 : vector<16x64xi32>
      %c0_i32_13 = arith.constant 0 : i32
      %53 = vector.broadcast %c0_i32_13 : i32 to vector<16x64xi32>
      %54 = arith.cmpi eq, %47, %53 : vector<16x64xi32>
      %c0_14 = arith.constant 0 : index
      %c0_15 = arith.constant 0 : index
      %55 = memref.load %arg2[%c0_14, %c0_15] : memref<4x8xf32, #tpu.memory_space<smem>>
      %56 = vector.broadcast %55 : f32 to vector<16x64xf32>
      %57 = arith.select %52, %56, %50 : vector<16x64xi1>, vector<16x64xf32>
      %c1 = arith.constant 1 : index
      %c0_16 = arith.constant 0 : index
      %58 = memref.load %arg2[%c1, %c0_16] : memref<4x8xf32, #tpu.memory_space<smem>>
      %59 = vector.broadcast %58 : f32 to vector<16x64xf32>
      %60 = arith.select %52, %59, %50 : vector<16x64xi1>, vector<16x64xf32>
      %c2 = arith.constant 2 : index
      %c0_17 = arith.constant 0 : index
      %61 = memref.load %arg2[%c2, %c0_17] : memref<4x8xf32, #tpu.memory_space<smem>>
      %62 = vector.broadcast %61 : f32 to vector<16x64xf32>
      %63 = arith.select %54, %62, %50 : vector<16x64xi1>, vector<16x64xf32>
      %c3 = arith.constant 3 : index
      %c0_18 = arith.constant 0 : index
      %64 = memref.load %arg2[%c3, %c0_18] : memref<4x8xf32, #tpu.memory_space<smem>>
      %65 = vector.broadcast %64 : f32 to vector<16x64xf32>
      %66 = arith.select %54, %65, %50 : vector<16x64xi1>, vector<16x64xf32>
      %c1_i32 = arith.constant 1 : i32
      %67 = vector.broadcast %c1_i32 : i32 to vector<16x64xi32>
      %68 = arith.cmpi eq, %44, %67 : vector<16x64xi32>
      %c1_i32_19 = arith.constant 1 : i32
      %69 = vector.broadcast %c1_i32_19 : i32 to vector<16x64xi32>
      %70 = arith.cmpi eq, %47, %69 : vector<16x64xi32>
      %c0_20 = arith.constant 0 : index
      %c1_21 = arith.constant 1 : index
      %71 = memref.load %arg2[%c0_20, %c1_21] : memref<4x8xf32, #tpu.memory_space<smem>>
      %72 = vector.broadcast %71 : f32 to vector<16x64xf32>
      %73 = arith.select %68, %72, %57 : vector<16x64xi1>, vector<16x64xf32>
      %c1_22 = arith.constant 1 : index
      %c1_23 = arith.constant 1 : index
      %74 = memref.load %arg2[%c1_22, %c1_23] : memref<4x8xf32, #tpu.memory_space<smem>>
      %75 = vector.broadcast %74 : f32 to vector<16x64xf32>
      %76 = arith.select %68, %75, %60 : vector<16x64xi1>, vector<16x64xf32>
      %c2_24 = arith.constant 2 : index
      %c1_25 = arith.constant 1 : index
      %77 = memref.load %arg2[%c2_24, %c1_25] : memref<4x8xf32, #tpu.memory_space<smem>>
      %78 = vector.broadcast %77 : f32 to vector<16x64xf32>
      %79 = arith.select %70, %78, %63 : vector<16x64xi1>, vector<16x64xf32>
      %c3_26 = arith.constant 3 : index
      %c1_27 = arith.constant 1 : index
      %80 = memref.load %arg2[%c3_26, %c1_27] : memref<4x8xf32, #tpu.memory_space<smem>>
      %81 = vector.broadcast %80 : f32 to vector<16x64xf32>
      %82 = arith.select %70, %81, %66 : vector<16x64xi1>, vector<16x64xf32>
      %c2_i32 = arith.constant 2 : i32
      %83 = vector.broadcast %c2_i32 : i32 to vector<16x64xi32>
      %84 = arith.cmpi eq, %44, %83 : vector<16x64xi32>
      %c2_i32_28 = arith.constant 2 : i32
      %85 = vector.broadcast %c2_i32_28 : i32 to vector<16x64xi32>
      %86 = arith.cmpi eq, %47, %85 : vector<16x64xi32>
      %c0_29 = arith.constant 0 : index
      %c2_30 = arith.constant 2 : index
      %87 = memref.load %arg2[%c0_29, %c2_30] : memref<4x8xf32, #tpu.memory_space<smem>>
      %88 = vector.broadcast %87 : f32 to vector<16x64xf32>
      %89 = arith.select %84, %88, %73 : vector<16x64xi1>, vector<16x64xf32>
      %c1_31 = arith.constant 1 : index
      %c2_32 = arith.constant 2 : index
      %90 = memref.load %arg2[%c1_31, %c2_32] : memref<4x8xf32, #tpu.memory_space<smem>>
      %91 = vector.broadcast %90 : f32 to vector<16x64xf32>
      %92 = arith.select %84, %91, %76 : vector<16x64xi1>, vector<16x64xf32>
      %c2_33 = arith.constant 2 : index
      %c2_34 = arith.constant 2 : index
      %93 = memref.load %arg2[%c2_33, %c2_34] : memref<4x8xf32, #tpu.memory_space<smem>>
      %94 = vector.broadcast %93 : f32 to vector<16x64xf32>
      %95 = arith.select %86, %94, %79 : vector<16x64xi1>, vector<16x64xf32>
      %c3_35 = arith.constant 3 : index
      %c2_36 = arith.constant 2 : index
      %96 = memref.load %arg2[%c3_35, %c2_36] : memref<4x8xf32, #tpu.memory_space<smem>>
      %97 = vector.broadcast %96 : f32 to vector<16x64xf32>
      %98 = arith.select %86, %97, %82 : vector<16x64xi1>, vector<16x64xf32>
      %c3_i32 = arith.constant 3 : i32
      %99 = vector.broadcast %c3_i32 : i32 to vector<16x64xi32>
      %100 = arith.cmpi eq, %44, %99 : vector<16x64xi32>
      %c3_i32_37 = arith.constant 3 : i32
      %101 = vector.broadcast %c3_i32_37 : i32 to vector<16x64xi32>
      %102 = arith.cmpi eq, %47, %101 : vector<16x64xi32>
      %c0_38 = arith.constant 0 : index
      %c3_39 = arith.constant 3 : index
      %103 = memref.load %arg2[%c0_38, %c3_39] : memref<4x8xf32, #tpu.memory_space<smem>>
      %104 = vector.broadcast %103 : f32 to vector<16x64xf32>
      %105 = arith.select %100, %104, %89 : vector<16x64xi1>, vector<16x64xf32>
      %c1_40 = arith.constant 1 : index
      %c3_41 = arith.constant 3 : index
      %106 = memref.load %arg2[%c1_40, %c3_41] : memref<4x8xf32, #tpu.memory_space<smem>>
      %107 = vector.broadcast %106 : f32 to vector<16x64xf32>
      %108 = arith.select %100, %107, %92 : vector<16x64xi1>, vector<16x64xf32>
      %c2_42 = arith.constant 2 : index
      %c3_43 = arith.constant 3 : index
      %109 = memref.load %arg2[%c2_42, %c3_43] : memref<4x8xf32, #tpu.memory_space<smem>>
      %110 = vector.broadcast %109 : f32 to vector<16x64xf32>
      %111 = arith.select %102, %110, %95 : vector<16x64xi1>, vector<16x64xf32>
      %c3_44 = arith.constant 3 : index
      %c3_45 = arith.constant 3 : index
      %112 = memref.load %arg2[%c3_44, %c3_45] : memref<4x8xf32, #tpu.memory_space<smem>>
      %113 = vector.broadcast %112 : f32 to vector<16x64xf32>
      %114 = arith.select %102, %113, %98 : vector<16x64xi1>, vector<16x64xf32>
      %c4_i32 = arith.constant 4 : i32
      %115 = vector.broadcast %c4_i32 : i32 to vector<16x64xi32>
      %116 = arith.cmpi eq, %44, %115 : vector<16x64xi32>
      %c4_i32_46 = arith.constant 4 : i32
      %117 = vector.broadcast %c4_i32_46 : i32 to vector<16x64xi32>
      %118 = arith.cmpi eq, %47, %117 : vector<16x64xi32>
      %c0_47 = arith.constant 0 : index
      %c4 = arith.constant 4 : index
      %119 = memref.load %arg2[%c0_47, %c4] : memref<4x8xf32, #tpu.memory_space<smem>>
      %120 = vector.broadcast %119 : f32 to vector<16x64xf32>
      %121 = arith.select %116, %120, %105 : vector<16x64xi1>, vector<16x64xf32>
      %c1_48 = arith.constant 1 : index
      %c4_49 = arith.constant 4 : index
      %122 = memref.load %arg2[%c1_48, %c4_49] : memref<4x8xf32, #tpu.memory_space<smem>>
      %123 = vector.broadcast %122 : f32 to vector<16x64xf32>
      %124 = arith.select %116, %123, %108 : vector<16x64xi1>, vector<16x64xf32>
      %c2_50 = arith.constant 2 : index
      %c4_51 = arith.constant 4 : index
      %125 = memref.load %arg2[%c2_50, %c4_51] : memref<4x8xf32, #tpu.memory_space<smem>>
      %126 = vector.broadcast %125 : f32 to vector<16x64xf32>
      %127 = arith.select %118, %126, %111 : vector<16x64xi1>, vector<16x64xf32>
      %c3_52 = arith.constant 3 : index
      %c4_53 = arith.constant 4 : index
      %128 = memref.load %arg2[%c3_52, %c4_53] : memref<4x8xf32, #tpu.memory_space<smem>>
      %129 = vector.broadcast %128 : f32 to vector<16x64xf32>
      %130 = arith.select %118, %129, %114 : vector<16x64xi1>, vector<16x64xf32>
      %c5_i32 = arith.constant 5 : i32
      %131 = vector.broadcast %c5_i32 : i32 to vector<16x64xi32>
      %132 = arith.cmpi eq, %44, %131 : vector<16x64xi32>
      %c5_i32_54 = arith.constant 5 : i32
      %133 = vector.broadcast %c5_i32_54 : i32 to vector<16x64xi32>
      %134 = arith.cmpi eq, %47, %133 : vector<16x64xi32>
      %c0_55 = arith.constant 0 : index
      %c5 = arith.constant 5 : index
      %135 = memref.load %arg2[%c0_55, %c5] : memref<4x8xf32, #tpu.memory_space<smem>>
      %136 = vector.broadcast %135 : f32 to vector<16x64xf32>
      %137 = arith.select %132, %136, %121 : vector<16x64xi1>, vector<16x64xf32>
      %c1_56 = arith.constant 1 : index
      %c5_57 = arith.constant 5 : index
      %138 = memref.load %arg2[%c1_56, %c5_57] : memref<4x8xf32, #tpu.memory_space<smem>>
      %139 = vector.broadcast %138 : f32 to vector<16x64xf32>
      %140 = arith.select %132, %139, %124 : vector<16x64xi1>, vector<16x64xf32>
      %c2_58 = arith.constant 2 : index
      %c5_59 = arith.constant 5 : index
      %141 = memref.load %arg2[%c2_58, %c5_59] : memref<4x8xf32, #tpu.memory_space<smem>>
      %142 = vector.broadcast %141 : f32 to vector<16x64xf32>
      %143 = arith.select %134, %142, %127 : vector<16x64xi1>, vector<16x64xf32>
      %c3_60 = arith.constant 3 : index
      %c5_61 = arith.constant 5 : index
      %144 = memref.load %arg2[%c3_60, %c5_61] : memref<4x8xf32, #tpu.memory_space<smem>>
      %145 = vector.broadcast %144 : f32 to vector<16x64xf32>
      %146 = arith.select %134, %145, %130 : vector<16x64xi1>, vector<16x64xf32>
      %c6_i32 = arith.constant 6 : i32
      %147 = vector.broadcast %c6_i32 : i32 to vector<16x64xi32>
      %148 = arith.cmpi eq, %44, %147 : vector<16x64xi32>
      %c6_i32_62 = arith.constant 6 : i32
      %149 = vector.broadcast %c6_i32_62 : i32 to vector<16x64xi32>
      %150 = arith.cmpi eq, %47, %149 : vector<16x64xi32>
      %c0_63 = arith.constant 0 : index
      %c6 = arith.constant 6 : index
      %151 = memref.load %arg2[%c0_63, %c6] : memref<4x8xf32, #tpu.memory_space<smem>>
      %152 = vector.broadcast %151 : f32 to vector<16x64xf32>
      %153 = arith.select %148, %152, %137 : vector<16x64xi1>, vector<16x64xf32>
      %c1_64 = arith.constant 1 : index
      %c6_65 = arith.constant 6 : index
      %154 = memref.load %arg2[%c1_64, %c6_65] : memref<4x8xf32, #tpu.memory_space<smem>>
      %155 = vector.broadcast %154 : f32 to vector<16x64xf32>
      %156 = arith.select %148, %155, %140 : vector<16x64xi1>, vector<16x64xf32>
      %c2_66 = arith.constant 2 : index
      %c6_67 = arith.constant 6 : index
      %157 = memref.load %arg2[%c2_66, %c6_67] : memref<4x8xf32, #tpu.memory_space<smem>>
      %158 = vector.broadcast %157 : f32 to vector<16x64xf32>
      %159 = arith.select %150, %158, %143 : vector<16x64xi1>, vector<16x64xf32>
      %c3_68 = arith.constant 3 : index
      %c6_69 = arith.constant 6 : index
      %160 = memref.load %arg2[%c3_68, %c6_69] : memref<4x8xf32, #tpu.memory_space<smem>>
      %161 = vector.broadcast %160 : f32 to vector<16x64xf32>
      %162 = arith.select %150, %161, %146 : vector<16x64xi1>, vector<16x64xf32>
      %c7_i32 = arith.constant 7 : i32
      %163 = vector.broadcast %c7_i32 : i32 to vector<16x64xi32>
      %164 = arith.cmpi eq, %44, %163 : vector<16x64xi32>
      %c7_i32_70 = arith.constant 7 : i32
      %165 = vector.broadcast %c7_i32_70 : i32 to vector<16x64xi32>
      %166 = arith.cmpi eq, %47, %165 : vector<16x64xi32>
      %c0_71 = arith.constant 0 : index
      %c7 = arith.constant 7 : index
      %167 = memref.load %arg2[%c0_71, %c7] : memref<4x8xf32, #tpu.memory_space<smem>>
      %168 = vector.broadcast %167 : f32 to vector<16x64xf32>
      %169 = arith.select %164, %168, %153 : vector<16x64xi1>, vector<16x64xf32>
      %c1_72 = arith.constant 1 : index
      %c7_73 = arith.constant 7 : index
      %170 = memref.load %arg2[%c1_72, %c7_73] : memref<4x8xf32, #tpu.memory_space<smem>>
      %171 = vector.broadcast %170 : f32 to vector<16x64xf32>
      %172 = arith.select %164, %171, %156 : vector<16x64xi1>, vector<16x64xf32>
      %c2_74 = arith.constant 2 : index
      %c7_75 = arith.constant 7 : index
      %173 = memref.load %arg2[%c2_74, %c7_75] : memref<4x8xf32, #tpu.memory_space<smem>>
      %174 = vector.broadcast %173 : f32 to vector<16x64xf32>
      %175 = arith.select %166, %174, %159 : vector<16x64xi1>, vector<16x64xf32>
      %c3_76 = arith.constant 3 : index
      %c7_77 = arith.constant 7 : index
      %176 = memref.load %arg2[%c3_76, %c7_77] : memref<4x8xf32, #tpu.memory_space<smem>>
      %177 = vector.broadcast %176 : f32 to vector<16x64xf32>
      %178 = arith.select %166, %177, %162 : vector<16x64xi1>, vector<16x64xf32>
      %c4_i32_78 = arith.constant 4 : i32
      %179 = vector.broadcast %c4_i32_78 : i32 to vector<16x64xi32>
      %180 = arith.cmpi slt, %44, %179 : vector<16x64xi32>
      %c4_i32_79 = arith.constant 4 : i32
      %181 = vector.broadcast %c4_i32_79 : i32 to vector<16x64xi32>
      %182 = arith.cmpi slt, %47, %181 : vector<16x64xi32>
      %183 = arith.andi %180, %182 : vector<16x64xi1>
      %c4_i32_80 = arith.constant 4 : i32
      %184 = vector.broadcast %c4_i32_80 : i32 to vector<16x64xi32>
      %185 = arith.cmpi slt, %44, %184 : vector<16x64xi32>
      %c4_i32_81 = arith.constant 4 : i32
      %186 = vector.broadcast %c4_i32_81 : i32 to vector<16x64xi32>
      %187 = arith.cmpi sge, %47, %186 : vector<16x64xi32>
      %188 = arith.andi %185, %187 : vector<16x64xi1>
      %c4_i32_82 = arith.constant 4 : i32
      %189 = vector.broadcast %c4_i32_82 : i32 to vector<16x64xi32>
      %190 = arith.cmpi sge, %44, %189 : vector<16x64xi32>
      %c4_i32_83 = arith.constant 4 : i32
      %191 = vector.broadcast %c4_i32_83 : i32 to vector<16x64xi32>
      %192 = arith.cmpi slt, %47, %191 : vector<16x64xi32>
      %193 = arith.andi %190, %192 : vector<16x64xi1>
      %c4_i32_84 = arith.constant 4 : i32
      %194 = vector.broadcast %c4_i32_84 : i32 to vector<16x64xi32>
      %195 = arith.subi %47, %194 : vector<16x64xi32>
      %196 = arith.cmpi eq, %195, %44 : vector<16x64xi32>
      %197 = arith.andi %188, %196 : vector<16x64xi1>
      %c4_i32_85 = arith.constant 4 : i32
      %198 = vector.broadcast %c4_i32_85 : i32 to vector<16x64xi32>
      %199 = arith.subi %44, %198 : vector<16x64xi32>
      %200 = arith.cmpi eq, %199, %47 : vector<16x64xi32>
      %201 = arith.andi %193, %200 : vector<16x64xi1>
      %202 = arith.subf %169, %175 : vector<16x64xf32>
      %203 = arith.mulf %202, %202 : vector<16x64xf32>
      %204 = arith.subf %172, %178 : vector<16x64xf32>
      %205 = arith.mulf %204, %204 : vector<16x64xf32>
      %206 = arith.addf %203, %205 : vector<16x64xf32>
      %207 = math.sqrt %206 : vector<16x64xf32>
      %208 = arith.subf %172, %169 : vector<16x64xf32>
      %cst_86 = arith.constant 0.707106769 : f32
      %209 = vector.broadcast %cst_86 : f32 to vector<16x64xf32>
      %210 = arith.mulf %208, %209 : vector<16x64xf32>
      %211 = arith.subf %178, %175 : vector<16x64xf32>
      %cst_87 = arith.constant 0.707106769 : f32
      %212 = vector.broadcast %cst_87 : f32 to vector<16x64xf32>
      %213 = arith.mulf %211, %212 : vector<16x64xf32>
      %214 = arith.andi %183, %49 : vector<16x64xi1>
      %cst_88 = arith.constant 0.000000e+00 : f32
      %215 = vector.broadcast %cst_88 : f32 to vector<16x64xf32>
      %216 = arith.select %214, %207, %215 : vector<16x64xi1>, vector<16x64xf32>
      %217 = vector.shape_cast %216 : vector<16x64xf32> to vector<1x16x64xf32>
      %cst_89 = arith.constant dense<0xFF800000> : vector<1xf32>
      %218 = vector.multi_reduction <maximumf>, %217, %cst_89 [1, 2] : vector<1x16x64xf32> to vector<1xf32>
      %219 = vector.shape_cast %218 : vector<1xf32> to vector<1x1x1xf32>
      %220 = vector.extract %219[0, 0, 0] : f32 from vector<1x1x1xf32>
      %221 = arith.andi %197, %49 : vector<16x64xi1>
      %cst_90 = arith.constant 0.000000e+00 : f32
      %222 = vector.broadcast %cst_90 : f32 to vector<16x64xf32>
      %223 = arith.select %221, %210, %222 : vector<16x64xi1>, vector<16x64xf32>
      %224 = vector.shape_cast %223 : vector<16x64xf32> to vector<1x16x64xf32>
      %cst_91 = arith.constant dense<0xFF800000> : vector<1xf32>
      %225 = vector.multi_reduction <maximumf>, %224, %cst_91 [1, 2] : vector<1x16x64xf32> to vector<1xf32>
      %226 = vector.shape_cast %225 : vector<1xf32> to vector<1x1x1xf32>
      %227 = vector.extract %226[0, 0, 0] : f32 from vector<1x1x1xf32>
      %228 = arith.maximumf %220, %227 : f32
      %cst_92 = arith.constant 0.000000e+00 : f32
      %229 = vector.broadcast %cst_92 : f32 to vector<16x64xf32>
      %230 = arith.select %183, %207, %229 : vector<16x64xi1>, vector<16x64xf32>
      %231 = vector.broadcast %220 : f32 to vector<16x64xf32>
      %232 = arith.select %197, %210, %231 : vector<16x64xi1>, vector<16x64xf32>
      %233 = arith.select %188, %232, %230 : vector<16x64xi1>, vector<16x64xf32>
      %234 = vector.broadcast %228 : f32 to vector<16x64xf32>
      %235 = arith.select %201, %213, %234 : vector<16x64xi1>, vector<16x64xf32>
      %236 = arith.select %193, %235, %233 : vector<16x64xi1>, vector<16x64xf32>
      %cst_93 = arith.constant 0.000000e+00 : f32
      %237 = vector.broadcast %cst_93 : f32 to vector<16x64xf32>
      %238 = arith.select %49, %236, %237 : vector<16x64xi1>, vector<16x64xf32>
      %239 = arith.truncf %238 : vector<16x64xf32> to vector<16x64xbf16>
      %240 = arith.extf %239 : vector<16x64xbf16> to vector<16x64xf32>
      %241 = arith.subf %238, %240 : vector<16x64xf32>
      %242 = tpu.iota {dimensions = array<i32: 0>} : vector<16x64xi32>
      %c0_i32_94 = arith.constant 0 : i32
      %243 = vector.broadcast %c0_i32_94 : i32 to vector<16x64xi32>
      %244 = arith.cmpi eq, %242, %243 : vector<16x64xi32>
      %c1_i32_95 = arith.constant 1 : i32
      %245 = vector.broadcast %c1_i32_95 : i32 to vector<16x64xi32>
      %246 = arith.cmpi eq, %242, %245 : vector<16x64xi32>
      %cst_96 = arith.constant 0.000000e+00 : f32
      %247 = vector.broadcast %cst_96 : f32 to vector<16x64xf32>
      %248 = arith.select %246, %241, %247 : vector<16x64xi1>, vector<16x64xf32>
      %249 = arith.select %244, %240, %248 : vector<16x64xi1>, vector<16x64xf32>
      %250 = arith.truncf %249 : vector<16x64xf32> to vector<16x64xbf16>
      %c0_97 = arith.constant 0 : index
      %c0_98 = arith.constant 0 : index
      %251 = vector.load %arg5[%c0_97, %c0_98] : memref<16x64xbf16, #tpu.memory_space<vmem>>, vector<16x64xbf16>
      tpu.vector_store %arg5[%c0_97, %c0_98], %250 {strides = array<i32>} : memref<16x64xbf16, #tpu.memory_space<vmem>>, vector<16x64xbf16>,
      %cst_99 = arith.constant 0x7F800000 : f32
      %252 = vector.broadcast %cst_99 : f32 to vector<1x4096xf32>
      %c0_100 = arith.constant 0 : index
      %c0_101 = arith.constant 0 : index
      %253 = vector.load %arg6[%c0_100, %c0_101] : memref<1x4096xf32, #tpu.memory_space<vmem>>, vector<1x4096xf32>
      tpu.vector_store %arg6[%c0_100, %c0_101], %252 {strides = array<i32>} : memref<1x4096xf32, #tpu.memory_space<vmem>>, vector<1x4096xf32>,
    } else {
    }
    %c0 = arith.constant 0 : index
    %c0_1 = arith.constant 0 : index
    %3 = vector.load %arg5[%c0, %c0_1] : memref<16x64xbf16, #tpu.memory_space<vmem>>, vector<16x64xbf16>
    %c0_2 = arith.constant 0 : index
    %c0_3 = arith.constant 0 : index
    %4 = vector.load %arg3[%c0_2, %c0_3] : memref<64x4096xbf16, #tpu.memory_space<vmem>>, vector<64x4096xbf16>
    %cst = arith.constant dense<0.000000e+00> : vector<16x4096xf32>
    %5 = tpu.matmul %3, %4, %cst {dimension_numbers = #tpu.dot_dimension_numbers<[1], [0], [0], [1], [0, 0, 1, 1], [], []>} : vector<16x64xbf16>, vector<64x4096xbf16>, vector<16x4096xf32> -> vector<16x4096xf32>
    %6 = vector.extract_strided_slice %5 {offsets = [0, 0], sizes = [1, 4096], strides = [1, 1]} : vector<16x4096xf32> to vector<1x4096xf32>
    %7 = vector.extract_strided_slice %5 {offsets = [1, 0], sizes = [1, 4096], strides = [1, 1]} : vector<16x4096xf32> to vector<1x4096xf32>
    %8 = arith.addf %6, %7 : vector<1x4096xf32>
    %c0_4 = arith.constant 0 : index
    %c0_5 = arith.constant 0 : index
    %9 = vector.load %arg6[%c0_4, %c0_5] : memref<1x4096xf32, #tpu.memory_space<vmem>>, vector<1x4096xf32>
    %10 = arith.minimumf %9, %8 : vector<1x4096xf32>
    %c0_6 = arith.constant 0 : index
    %c0_7 = arith.constant 0 : index
    %11 = vector.load %arg6[%c0_6, %c0_7] : memref<1x4096xf32, #tpu.memory_space<vmem>>, vector<1x4096xf32>
    tpu.vector_store %arg6[%c0_6, %c0_7], %10 {strides = array<i32>} : memref<1x4096xf32, #tpu.memory_space<vmem>>, vector<1x4096xf32>,
    %c9_i32 = arith.constant 9 : i32
    %12 = arith.cmpi eq, %arg1, %c9_i32 : i32
    %13 = arith.extui %12 : i1 to i32
    %c0_i32_8 = arith.constant 0 : i32
    %14 = arith.cmpi ne, %13, %c0_i32_8 : i32
    scf.if %14 {
      %c0_9 = arith.constant 0 : index
      %c0_10 = arith.constant 0 : index
      %15 = vector.load %arg6[%c0_9, %c0_10] : memref<1x4096xf32, #tpu.memory_space<vmem>>, vector<1x4096xf32>
      %cst_11 = arith.constant dense<0x7F800000> : vector<1xf32>
      %16 = vector.multi_reduction <minimumf>, %15, %cst_11 [1] : vector<1x4096xf32> to vector<1xf32>
      %17 = vector.shape_cast %16 : vector<1xf32> to vector<1x1xf32>
      %c0_12 = arith.constant 0 : index
      %c0_13 = arith.constant 0 : index
      %c0_14 = arith.constant 0 : index
      %18 = vector.load %arg4[%c0_12, %c0_13, %c0_14] : memref<1x1x1xf32, #tpu.memory_space<vmem>>, vector<1x1x1xf32>
      %19 = vector.shape_cast %18 : vector<1x1x1xf32> to vector<1x1xf32>
      %20 = vector.shape_cast %17 : vector<1x1xf32> to vector<1x1x1xf32>
      tpu.vector_store %arg4[%c0_12, %c0_13, %c0_14], %20 {strides = array<i32>} : memref<1x1x1xf32, #tpu.memory_space<vmem>>, vector<1x1x1xf32>,
    } else {
    }
    return
  }
  func.func @transform_0(%arg0: i32, %arg1: i32) -> (i32, i32) {
    %c0_i32 = arith.constant 0 : i32
    %c0_i32_0 = arith.constant 0 : i32
    %c0_i32_1 = arith.constant 0 : i32
    return %c0_i32, %c0_i32_0 : i32, i32
  }
  func.func @transform_1(%arg0: i32, %arg1: i32) -> (i32, i32) {
    %c10_i32 = arith.constant 10 : i32
    %0 = arith.muli %arg0, %c10_i32 : i32
    %1 = arith.addi %0, %arg1 : i32
    %c0_i32 = arith.constant 0 : i32
    %c0_i32_0 = arith.constant 0 : i32
    return %c0_i32, %1 : i32, i32
  }
  func.func @transform_2(%arg0: i32, %arg1: i32) -> (i32, i32, i32) {
    %c0_i32 = arith.constant 0 : i32
    %c0_i32_0 = arith.constant 0 : i32
    %c0_i32_1 = arith.constant 0 : i32
    return %arg0, %c0_i32, %c0_i32_0 : i32, i32, i32
  }
}

</mosaic_0001>

<bundles_post_ra>
// kernel: _lambda_.1
= control target key start
LH: loop header
LB: loop body
LE: loop exit
PB: predicated region body
PF: predicated region fallthrough
CT: control target
= control target key end

     0   :  { %s3659_s0 = inlined_call_operand.hbm [shape: f32[4,8], index: 0, kind: input, shape index: {}]   ;;  %s3660_s1 = inlined_call_operand.hbm [shape: bf16[64,40960], index: 1, kind: input, shape index: {}]   ;;  %s3661_s2 = inlined_call_operand.hbm [shape: f32[1,1,1], index: 2, kind: output, shape index: {}]  }
   0x1   :  { %3666 = sst [smem:[#allocation13_spill]] %s3659_s0 }
   0x2   :  { %3667 = sst [smem:[#allocation14_spill]] %s3660_s1 }
   0x3   :  { %7 = vsyncpa [#allocation7], 0 }
   0x4   :  { %8 = vsyncpa [#allocation5], 0 }
   0x5   :  { %10 = vsyncpa [#allocation5 + $0x1], 0 }
   0x6   :  { %11 = vsyncpa [#allocation6], 0  ;;  %s2962_s9 = smov 0   ;;  %s2964_s10 = smov 0  }
   0x7   :  { %s2966_s11 = smov 0   ;;  %s2968_s12 = smov 0  }
   0x8   :  { %s2970_s13 = smov 0   ;;  %s2972_s14 = smov 0  }
   0x9 LB: > { %s3665_s15 = sadd.s32 4294967295, %s2934_s14   ;;  %s61_s16 = sadd.s32 1, %s2922_s11  ;;  %s2934_s14 = sphi %s2972_s14, %s17_s14   ;;  %s2930_s13 = sphi %s2970_s13, %s3688_s13   ;;  %s2926_s12 = sphi %s2968_s12, %s3687_s12   ;;  %s2922_s11 = sphi %s2966_s11, %s3686_s11   ;;  %s2918_s10 = sphi %s2964_s10, %s3685_s10   ;;  %s2914_s9 = sphi %s2962_s9, %s3684_s9  }
   0xa   : > { %p68_p0 = scmp.ne.s32.totalorder %s2922_s11, %s2918_s10  ;;  %p69_p1 = scmp.eq.s32.totalorder %s2934_s14, 0 }
   0xb   : > { %p74_p2 = scmp.ne.s32.totalorder %s2918_s10, %s2914_s9  ;;  %p2998_p3 = scmp.eq.s32.totalorder %s3665_s15, 0 }
   0xc   : > { %p70_p4 = por %p69_p1, %p68_p0  ;;  %p2527_p5 = scmp.ge.s32.totalorder %s2934_s14, 1 }
   0xd   : > { %s3668_s17 = scalar_select %p2998_p3, 1, 0 }
   0xe   : > { %p3005_p6 = por %p2998_p3, %p74_p2  ;;  %p111_p7 = scmp.lt.s32.totalorder %s2934_s14, 11 }
   0xf   : > { %p2743_p9 = scmp.lt.s32.totalorder %s2934_s14, 10  ;;  %s26_s21 = sadd.s32 1, %s2930_s13 }
  0x10   : > { %s3669_s18 = scalar_select %p3005_p6, 1, 0 }
  0x11   : > { %p3010_p8 = pnand %p2527_p5, %p111_p7  ;;  %p3017_p11 = pnand %p2743_p9, %p70_p4 }
  0x12   : > { %p27_p13 = scmp.ge.s32.totalorder %s26_s21, 10  ;;  %s133_s22 = sand.u32 1, %s2922_s11  }
  0x13   : > { %p2734_p10 = pneg %p3010_p8  ;;  %s3672_s0 = sld [smem:[#allocation13_spill]] }
  0x15   : > { %p2735_p12 = pnand %p2734_p10, %p2998_p3 }
  0x17   : > { %p2809_p1 = pneg %p2735_p12 }
  0x19   : > { %s2807_s25 = scalar_lea.hbm %s3672_s0, 64 }
  0x1a   : > { %p2808_p0 = scmp.ne.s32.totalorder %s3672_s0, %s2807_s25  ;;  %p2814_p4 = scmp.lt.u32.totalorder %s2807_s25, %s3672_s0 }
  0x1c   : > { %p2810_p2 = pnand %p2809_p1, %p2808_p0 }
  0x1e   : > { %p2811_p5 = pneg %p2810_p2 }
  0x20   : > { %p2816_p7 = pnand %p2814_p4, %p2811_p5 }
  0x22   : > { %2819 = shalt.err (!%p2816_p7)
}
  0x23   : > { %s2936_s30 = smov [#allocation4]   ;;  %s3690_s21 = smov (%p27_p13, %s26_s21), 0 }
  0x24   : > { %2737 = dma.hbm_to_smem (!%p2735_p12), %s3672_s0, 64, %s2936_s30, [#allocation7]  }
  0x25   : > { %s2530_s5 = sshll.u32 %s133_s22, 10  ;;  %s2719_s6 = sshll.u32 %s2930_s13, 11 }
  0x26   : > { %s58_s7 = ssub.s32 %s2930_s13, %s3690_s21  ;;  %s3673_s1 = sld [smem:[#allocation14_spill]] }
  0x27   : > { %p59_p9 = scmp.eq.s32.totalorder %s58_s7, 0  ;;  %s137_s24 = scalar_lea.vmem [#allocation8], %s2530_s5 }
  0x28   : > { %s146_s25 = sshll.u32 %s137_s24, 4  ;;  %s3054_s27 = scalar_lea.sflag [#allocation5], %s133_s22  ;;  %s3052_s25 = int_to_ptr.vmem [resolvable:$true] %s146_s25 }
  0x29   : > { %s3050_s26 = scalar_select %p59_p9, %s2922_s11, %s61_s16  }
  0x2a   : > { %p2822_p12 = pneg %p3017_p11 }
  0x2c   : > { %s3045_s23 = scalar_lea.hbm %s3673_s1, %s2719_s6  ;;  %s2825_s3 = scalar_lea.hbm %s3673_s1, 163840 }
  0x2d   : > { %s2820_s28 = scalar_lea.hbm %s3045_s23, 16384  ;;  %p2826_p1 = scmp.lt.u32.totalorder %s3045_s23, %s3673_s1 }
  0x2e   : > { %p2821_p10 = scmp.ne.s32.totalorder %s3045_s23, %s2820_s28  ;;  %p2827_p2 = scmp.lt.u32.totalorder %s2825_s3, %s2820_s28 }
  0x2f   : > { %p2829_p4 = scmp.lt.u32.totalorder %s2820_s28, %s3045_s23 }
  0x30   : > { %p2823_p13 = pnand %p2822_p12, %p2821_p10  ;;  %p2828_p5 = por %p2827_p2, %p2826_p1 }
  0x32   : > { %p2824_p0 = pneg %p2823_p13  ;;  %p2830_p7 = por %p2829_p4, %p2828_p5 }
  0x34   : > { %p2831_p9 = pnand %p2830_p7, %p2824_p0 }
  0x36   : > { %2834 = shalt.err (!%p2831_p9)
}
  0x37   : > { %s2835_s16 = scalar_lea.vmem %s3052_s25, 16384  ;;  %s2937_s22 = smov [#allocation8]  }
  0x38   : > { %p2836_p10 = scmp.ne.s32.totalorder %s3052_s25, %s2835_s16  ;;  %s2840_s6 = sshll.u32 %s2937_s22, 4  ;;  %s2841_s6 = int_to_ptr.vmem [resolvable:$false] %s2840_s6 }
  0x39   : > { %s2842_s7 = scalar_lea.vmem %s2841_s6, 32768  ;;  %p2843_p3 = scmp.lt.s32.totalorder %s3052_s25, %s2841_s6 }
  0x3a   : > { %p2838_p13 = pnand %p2836_p10, %p2822_p12  ;;  %p2844_p1 = scmp.lt.s32.totalorder %s2842_s7, %s2835_s16 }
  0x3c   : > { %p2839_p6 = pneg %p2838_p13  ;;  %p2845_p2 = por %p2844_p1, %p2843_p3 }
  0x3e   : > { %p2846_p5 = pnand %p2845_p2, %p2839_p6 }
  0x40   : > { %2849 = shalt.err (!%p2846_p5)
}
  0x41   : > { %s2938_s8 = smov 20480   ;;  %s2939_s9 = smov 2048  }
  0x42   : > { %s2940_s24 = smov 128   ;;  %158 = sbr.rel (%p3010_p8) target bundleno = 903 (0x387), region = 28 }
  0x43   : > { %2741 = dma.hbm_to_vmem [thread:$0]  (!%p3017_p11), %s3045_s23, 16384, %s3052_s25, %s3054_s27, %s2938_s8, %s2939_s9, %s2940_s24  }
  0x44   : > { %p3674_p12 = scmp.ne.s32.totalorder (!%p3010_p8), %s3668_s17, 0 }
  0x49   : > { %2901 = dma.done.wait (%p3674_p12), [#allocation7], 64  }
  0x4a   : > { %2903 = vsyncadd (%p3674_p12), [#allocation7], 4294967232  ;;  %s164_s28 = sand.u32 1, %s2918_s10   ;;  %p3675_p3 = scmp.ne.s32.totalorder %s3669_s18, 0 }
  0x4b   : > { %s2535_s29 = sshll.u32 %s164_s28, 10  ;;  %s165_s30 = scalar_lea.sflag [#allocation5], %s164_s28 }
  0x4c   : > { %s3089_s3 = scalar_lea.vmem [#allocation8], %s2535_s29 }
  0x4d   : > { %2905 = dma.done.wait (%p3675_p3), %s165_s30, 16384  }
  0x4e   : > { %2907 = vsyncadd (%p3675_p3), %s165_s30, 4294950912 }
  0x4f   : > { %173 = sfence }
  0x50   : > { %p2536_p6 = scmp.ne.s32.totalorder %s2926_s12, 0 }
  0x51   : > { %v193_v0 = vlaneseq (!%p2536_p6)  ;;  %s3096_s19 = sld [smem:[#allocation4]] (!%p2536_p6)  ;;  %s3107_s25 = sld [smem:[#allocation4 + $0x1]] (!%p2536_p6)  ;;  %v2941_v2 = vmov (!%p2536_p6), 0  }
  0x52   : > { %192 = sbr.rel (%p2536_p6) target bundleno = 349 (0x15d), region = 40  ;;  %s3098_s17 = sld [smem:[#allocation4 + $0x80]] (!%p2536_p6) }
  0x53   : > { %v3101_v1 = vand.u32 (!%p2536_p6), 127, %v193_v0  ;;  %s3103_s20 = sld [smem:[#allocation4 + $0x100]] (!%p2536_p6)  ;;  %s3109_s18 = sld [smem:[#allocation4 + $0x81]] (!%p2536_p6) }
  0x54   : > { %s3105_s23 = sld [smem:[#allocation4 + $0x180]] (!%p2536_p6)  ;;  %s3115_s27 = sld [smem:[#allocation4 + $0x101]] (!%p2536_p6) }
  0x55   : > { %vm195_vm0 = vcmp.ge.s32.totalorder (!%p2536_p6), %v3101_v1, 8  ;;  %vm197_vm1 = vcmp.ge.s32.totalorder (!%p2536_p6), %v3101_v1, 16  ;;  %vm200_vm2 = vcmp.ge.s32.totalorder (!%p2536_p6), %v3101_v1, 24  ;;  %vm203_vm3 = vcmp.ge.s32.totalorder (!%p2536_p6), %v3101_v1, 32  ;;  %s3117_s4 = sld [smem:[#allocation4 + $0x181]] (!%p2536_p6)  ;;  %s3120_s5 = sld [smem:[#allocation4 + $0x2]] (!%p2536_p6) }
  0x56   : > { %v196_v3 = vsel (!%p2536_p6), %vm195_vm0, 1, %v2941_v2  ;;  %v198_v4 = vsel (!%p2536_p6), %vm197_vm1, 1, %v2941_v2  ;;  %v201_v5 = vsel (!%p2536_p6), %vm200_vm2, 1, %v2941_v2  ;;  %vm206_vm4 = vcmp.ge.s32.totalorder (!%p2536_p6), %v3101_v1, 40  ;;  %s3122_s16 = sld [smem:[#allocation4 + $0x82]] (!%p2536_p6)  ;;  %s3129_s7 = sld [smem:[#allocation4 + $0x3]] (!%p2536_p6) }
  0x57   : > { %v199_v6 = vadd.s32 (!%p2536_p6), %v198_v4, %v196_v3  ;;  %v204_v7 = vsel (!%p2536_p6), %vm203_vm3, 1, %v2941_v2  ;;  %s3124_s22 = sld [smem:[#allocation4 + $0x102]] (!%p2536_p6)  ;;  %vm209_vm5 = vcmp.ge.s32.totalorder (!%p2536_p6), %v3101_v1, 48  ;;  %s3131_s8 = sld [smem:[#allocation4 + $0x83]] (!%p2536_p6)  ;;  %v207_v9 = vsel (!%p2536_p6), %vm206_vm4, 1, %v2941_v2 }
  0x58   : > { %s3126_s6 = sld [smem:[#allocation4 + $0x182]] (!%p2536_p6)  ;;  %vm212_vm6 = vcmp.ge.s32.totalorder (!%p2536_p6), %v3101_v1, 56  ;;  %s3134_s9 = sld [smem:[#allocation4 + $0x103]] (!%p2536_p6)  ;;  %v210_v11 = vsel (!%p2536_p6), %vm209_vm5, 1, %v2941_v2  ;;  %v221_v14 = vstv (!%p2536_p6), %s3096_s19  ;;  %v224_v15 = vstv (!%p2536_p6), %s3098_s17 }
  0x59   : > { %v202_v8 = vadd.s32 %v201_v5, %v199_v6  ;;  %s3136_s24 = sld [smem:[#allocation4 + $0x183]]  ;;  %s3138_s28 = sld [smem:[#allocation4 + $0x4]]  ;;  %v213_v13 = vsel %vm212_vm6, 1, %v2941_v2  ;;  %v227_v16 = vstv %s3103_s20  ;;  %v235_v18 = vstv %s3107_s25 }
  0x5a   : > { %s3140_s29 = sld [smem:[#allocation4 + $0x84]]  ;;  %v230_v17 = vstv %s3105_s23  ;;  %v238_v19 = vstv %s3109_s18  ;;  %s3152_s0 = sld [smem:[#allocation4 + $0x5]]  ;;  %v241_v21 = vstv %s3115_s27 }
  0x5b   : > { %v205_v10 = vadd.s32 %v204_v7, %v202_v8  ;;  %s3142_s30 = sld [smem:[#allocation4 + $0x104]]  ;;  %s3154_s1 = sld [smem:[#allocation4 + $0x85]]  ;;  %v244_v22 = vstv %s3117_s4  ;;  %v249_v23 = vstv %s3120_s5 }
  0x5c   : > { %s3144_s15 = sld [smem:[#allocation4 + $0x184]]  ;;  %v252_v24 = vstv %s3122_s16  ;;  %v263_v27 = vstv %s3129_s7  ;;  %s3176_s19 = sld [smem:[#allocation4 + $0x105]] }
  0x5d   : > { %v208_v12 = vadd.s32 %v207_v9, %v205_v10  ;;  %v255_v25 = vstv %s3124_s22  ;;  %v266_v29 = vstv %s3131_s8  ;;  %s3180_s17 = sld [smem:[#allocation4 + $0x185]]  ;;  %s3188_s20 = sld [smem:[#allocation4 + $0x86]] }
  0x5e   : > { %v258_v26 = vstv %s3126_s6  ;;  %v269_v30 = vstv %s3134_s9  ;;  %s3192_s23 = sld [smem:[#allocation4 + $0x106]]  ;;  %s3211_s18 = sld [smem:[#allocation4 + $0x107]] }
  0x5f   : > { %v211_v20 = vadd.s32 %v210_v11, %v208_v12  ;;  %v272_v31 = vstv %s3136_s24  ;;  %v277_v32 = vstv %s3138_s28  ;;  %s3194_s25 = sld [smem:[#allocation4 + $0x186]]  ;;  %s3213_s27 = sld [smem:[#allocation4 + $0x187]] }
  0x60   : > { %v280_v33 = vstv %s3140_s29  ;;  %v291_v44 = vstv %s3152_s0  ;;  %s3204_s0 = sld [smem:[#allocation4 + $0x7]] }
  0x61   : > { %v3163_v28 = vadd.s32 %v213_v13, %v211_v20  ;;  %v283_v34 = vstv %s3142_s30  ;;  %v294_v45 = vstv %s3154_s1  ;;  %s3206_s1 = sld [smem:[#allocation4 + $0x87]] }
  0x62   : > { %v286_v35 = vstv %s3144_s15  ;;  %s3186_s15 = sld [smem:[#allocation4 + $0x6]]  ;;  %v297_v62 = vstv %s3176_s19 }
  0x63   : > { %v215_v36 = vmul.u32 8, %v3163_v28  ;;  %vm218_vm7 = vcmp.eq.s32.totalorder %v3163_v28, 0  ;;  %vm232_vm8 = vcmp.eq.s32.totalorder %v3163_v28, 1  ;;  %vm246_vm9 = vcmp.eq.s32.totalorder %v3163_v28, 2 }
  0x64   : > { %v222_v37 = vsel %vm218_vm7, %v221_v14, 0.0  ;;  %v225_v38 = vsel %vm218_vm7, %v224_v15, 0.0  ;;  %vm260_vm10 = vcmp.eq.s32.totalorder %v3163_v28, 3  ;;  %vm274_vm11 = vcmp.eq.s32.totalorder %v3163_v28, 4 }
  0x65   : > { %v3183_v39 = vsub.s32 %v3101_v1, %v215_v36  ;;  %v236_v40 = vsel %vm232_vm8, %v235_v18, %v222_v37  ;;  %v239_v41 = vsel %vm232_vm8, %v238_v19, %v225_v38  ;;  %vm288_vm12 = vcmp.eq.s32.totalorder %v3163_v28, 5 }
  0x66   : > { %v250_v42 = vsel %vm246_vm9, %v249_v23, %v236_v40  ;;  %v253_v43 = vsel %vm246_vm9, %v252_v24, %v239_v41  ;;  %v300_v63 = vstv %s3180_s17  ;;  %vm302_vm3 = vcmp.eq.s32.totalorder %v3163_v28, 6 }
  0x67   : > { %vm219_vm13 = vcmp.eq.s32.totalorder %v3183_v39, 0  ;;  %vm233_vm14 = vcmp.eq.s32.totalorder %v3183_v39, 1  ;;  %vm247_vm15 = vcmp.eq.s32.totalorder %v3183_v39, 2  ;;  %vm261_vm0 = vcmp.eq.s32.totalorder %v3183_v39, 3 }
  0x68   : > { %v228_v46 = vsel %vm219_vm13, %v227_v16, 0.0  ;;  %v231_v47 = vsel %vm219_vm13, %v230_v17, 0.0  ;;  %v264_v48 = vsel %vm260_vm10, %v263_v27, %v250_v42  ;;  %v267_v49 = vsel %vm260_vm10, %v266_v29, %v253_v43 }
  0x69   : > { %v242_v50 = vsel %vm233_vm14, %v241_v21, %v228_v46  ;;  %v245_v51 = vsel %vm233_vm14, %v244_v22, %v231_v47  ;;  %vm275_vm1 = vcmp.eq.s32.totalorder %v3183_v39, 4  ;;  %v278_v52 = vsel %vm274_vm11, %v277_v32, %v264_v48 }
  0x6a   : > { %v256_v53 = vsel %vm247_vm15, %v255_v25, %v242_v50  ;;  %v259_v54 = vsel %vm247_vm15, %v258_v26, %v245_v51  ;;  %v281_v55 = vsel %vm274_vm11, %v280_v33, %v267_v49  ;;  %vm289_vm2 = vcmp.eq.s32.totalorder %v3183_v39, 5 }
  0x6b   : > { %v270_v56 = vsel %vm261_vm0, %v269_v30, %v256_v53  ;;  %v273_v57 = vsel %vm261_vm0, %v272_v31, %v259_v54  ;;  %v292_v58 = vsel %vm288_vm12, %v291_v44, %v278_v52  ;;  %v295_v59 = vsel %vm288_vm12, %v294_v45, %v281_v55 }
  0x6c   : > { %v284_v60 = vsel %vm275_vm1, %v283_v34, %v270_v56  ;;  %v287_v61 = vsel %vm275_vm1, %v286_v35, %v273_v57  ;;  %vm303_vm4 = vcmp.eq.s32.totalorder %v3183_v39, 6  ;;  %v305_v4 = vstv %s3186_s15 }
  0x6d   : > { %v298_v2 = vsel %vm289_vm2, %v297_v62, %v284_v60  ;;  %v301_v3 = vsel %vm289_vm2, %v300_v63, %v287_v61  ;;  %v308_v5 = vstv %s3188_s20  ;;  %v311_v6 = vstv %s3192_s23 }
  0x6e   : > { %v314_v7 = vstv %s3194_s25  ;;  %v306_v8 = vsel %vm302_vm3, %v305_v4, %v292_v58  ;;  %v309_v9 = vsel %vm302_vm3, %v308_v5, %v295_v59  ;;  %v312_v10 = vsel %vm303_vm4, %v311_v6, %v298_v2 }
  0x6f   : > { %v315_v11 = vsel %vm303_vm4, %v314_v7, %v301_v3  ;;  %vm316_vm5 = vcmp.eq.s32.totalorder %v3163_v28, 7  ;;  %vm317_vm6 = vcmp.eq.s32.totalorder %v3183_v39, 7  ;;  %v319_v12 = vstv %s3204_s0 }
  0x70   : > { %v322_v13 = vstv %s3206_s1  ;;  %v320_v14 = vsel %vm316_vm5, %v319_v12, %v306_v8  ;;  %v325_v16 = vstv %s3211_s18  ;;  %v328_v17 = vstv %s3213_s27 }
  0x71   : > { %v323_v15 = vsel %vm316_vm5, %v322_v13, %v309_v9  ;;  %v326_v18 = vsel %vm317_vm6, %v325_v16, %v312_v10  ;;  %v329_v19 = vsel %vm317_vm6, %v328_v17, %v315_v11  ;;  %v2568_v25 = vadd.s32 4294967292, %v3183_v39 }
  0x72   : > { %v343_v20 = vsub.f32 %v320_v14, %v326_v18  ;;  %v345_v21 = vsub.f32 %v323_v15, %v329_v19  ;;  %vm333_vm7 = vcmp.ge.s32.totalorder %v3183_v39, 4  ;;  %vm330_vm8 = vcmp.lt.s32.totalorder %v3163_v28, 4 }
  0x73   : > { %vm331_vm9 = vcmp.lt.s32.totalorder %v3183_v39, 4  ;;  %vm3244_vm10 = vmand %vm330_vm8, %vm333_vm7  ;;  %vm338_vm11 = vcmp.eq.s32.totalorder %v2568_v25, %v3163_v28  ;;  %v355_v27 = vsub.f32 %v323_v15, %v320_v14  ;;  %vm217_vm12 = vcmp.lt.s32.totalorder %v3101_v1, 64 }
  0x74   : > { %v344_v22 = vmul.f32 %v343_v20, %v343_v20  ;;  %v346_v23 = vmul.f32 %v345_v21, %v345_v21  ;;  %vm3252_vm13 = vmand %vm330_vm8, %vm331_vm9  ;;  %vm361_vm3 = vcmask 523264   ;;  %v2942_v43 = vmov inf  }
  0x75   : > { %vm3258_vm14 = vmand %vm3244_vm10, %vm338_vm11  ;;  %v356_v34 = vmul.f32 0.70710677, %v355_v27  ;;  %397 = vst [vmem:[#allocation3] sm:$0xff] %v2942_v43  ;;  %v2569_v46 = vadd.s32 4294967292, %v3163_v28  ;;  %vm335_vm4 = vcmp.ge.s32.totalorder %v3163_v28, 4  ;;  %v357_v47 = vsub.f32 %v329_v19, %v326_v18 }
  0x76   : > { %v347_v24 = vadd.f32 %v346_v23, %v344_v22  ;;  %vm359_vm1 = vmand %vm3252_vm13, %vm217_vm12  ;;  %398 = vst [vmem:[#allocation3 + $0x8] sm:$0xff] %v2942_v43  ;;  %v385_v55 = vshrl.u32 %v193_v0, 7  ;;  %v2943_v60 = vmov 0.0  }
  0x77   : > { %vm366_vm2 = vmand %vm3258_vm14, %vm217_vm12  ;;  %399 = vst [vmem:[#allocation3 + $0x10] sm:$0xff] %v2942_v43  ;;  %vm341_vm6 = vcmp.eq.s32.totalorder %v2569_v46, %v3183_v39  ;;  %v358_v49 = vmul.f32 0.70710677, %v357_v47 }
  0x78   : > { %2805 = vrsqrt.f32 %v347_v24  ;;  %vm350_vm15 = vcmp.eq.f32.partialorder %v347_v24, inf  ;;  %v353_v32 = vand.u32 2147483648, %v347_v24  ;;  %vm352_vm0 = vcmp.eq.f32.partialorder %v347_v24, 0.0  ;;  %400 = vst [vmem:[#allocation3 + $0x18] sm:$0xff] %v2942_v43  ;;  %vm336_vm5 = vmand %vm335_vm4, %vm331_vm9 }
  0x79   : > { %v367_v40 = vsel %vm366_vm2, %v356_v34, 0.0  ;;  %vm342_vm7 = vmand %vm336_vm5, %vm341_vm6  ;;  %vm389_vm8 = vcmp.eq.s32.totalorder %v385_v55, 1  ;;  %vm387_vm9 = vcmp.eq.s32.totalorder %v385_v55, 0 }
  0x7a   : > { %v368_v42 = vsel %vm361_vm3, %v367_v40, -inf }
  0x82   : > { %v2806_v31 = vpop.eup %2805 }
  0x83   : > { %v349_v33 = vmul.f32 %v2806_v31, %v347_v24 }
  0x85   : > { %v351_v35 = vsel %vm350_vm15, %v347_v24, %v349_v33 }
  0x86   : > { %v354_v36 = vsel %vm352_vm0, %v353_v32, %v351_v35 }
  0x87   : > { %v360_v37 = vsel %vm359_vm1, %v354_v36, 0.0  ;;  %v373_v38 = vsel %vm3252_vm13, %v354_v36, 0.0 }
  0x88   : > { %v362_v41 = vsel %vm361_vm3, %v360_v37, -inf }
  0x89   : > { %363 = vmax.xlane.f32.xlu0 %v362_v41 }
  0x8d   : > { %369 = vmax.xlane.f32.xlu0 %v368_v42 }
 0x116   : > { %v364_v44 = vpop.xlane.xlu0 %363 }
 0x117   : > { %2720 = vpush %v364_v44 }
 0x11a   : > { %v370_v45 = vpop.xlane.xlu0 %369 }
 0x11b   : > { %2722 = vpush %v370_v45 }
 0x148   : > { %s2721_s4 = spop %2720 }
 0x149   : > { %v374_v48 = vstv %s2721_s4 }
 0x14a   : > { %v375_v50 = vsel %vm3258_vm14, %v356_v34, %v374_v48 }
 0x14b   : > { %v376_v52 = vsel %vm3244_vm10, %v375_v50, %v373_v38 }
 0x14c   : > { %s2723_s5 = spop %2722 }
 0x14d   : > { %s372_s16 = smax.f32 %s2723_s5, %s2721_s4 }
 0x14e   : > { %v377_v51 = vstv %s372_s16 }
 0x14f   : > { %v378_v28 = vsel %vm342_vm7, %v358_v49, %v377_v51 }
 0x150   : > { %v379_v53 = vsel %vm336_vm5, %v378_v28, %v376_v52 }
 0x151   : > { %v380_v54 = vsel %vm217_vm12, %v379_v53, 0.0 }
 0x152   : > { %v381_v56 = vpack.c.bf16 %v380_v54, %v380_v54 }
 0x154   : > { %v382_v39 = vunpack.c.l.bf16 %v381_v56 }
 0x156   : > { %v383_v57 = vsub.f32 %v380_v54, %v382_v39 }
 0x158   : > { %v391_v58 = vsel %vm389_vm8, %v383_v57, 0.0 }
 0x159   : > { %v393_v59 = vsel %vm387_vm9, %v382_v39, %v391_v58 }
 0x15a   : > { %v395_v61 = vpack.c.bf16 %v2943_v60, %v393_v59 }
 0x15c   : > { %396 = vst.msk [vmem:[#allocation2] sm:$0xff] %vm361_vm3, %v395_v61 }
 0x15d PF: > { %v402_v0 = vld [vmem:[%s3089_s3] sm:$0xff]  ;;  %v403_v62 = vld [vmem:[%s3089_s3 + $0x8] sm:$0xff]  ;;  %v2944_v6 = vmov 0   ;;  %v404_v30 = vld [vmem:[%s3089_s3 + $0x10] sm:$0xff]  ;;  %vm1170_vm10 = vcmask 523264   ;;  %p2714_p8 = scmp.ne.s32.totalorder %s2926_s12, 9 }
 0x15e   : > { %v418_v1 = vld [vmem:[%s3089_s3 + $0x80] sm:$0xff]  ;;  %v419_v2 = vld [vmem:[%s3089_s3 + $0x88] sm:$0xff]  ;;  %1206 = vmatprep.mubr.bf16.mxu0 %v2944_v6  ;;  %1247 = vmatprep.mubr.bf16.mxu1 %v2944_v6  ;;  %v420_v31 = vld [vmem:[%s3089_s3 + $0x90] sm:$0xff]  ;;  %vm2374_vm11 = vcmask (!%p2714_p8), 1040384   ;;  %vm2440_vm12 = vcmask (!%p2714_p8), 0  }
 0x15f   : > { %v2571_v63 = vcombine.high %v402_v0, %v418_v1  ;;  %v2570_v3 = vcombine.low %v402_v0, %v418_v1  ;;  %v434_v4 = vld [vmem:[%s3089_s3 + $0x100] sm:$0xff]  ;;  %v2573_v7 = vcombine.high %v403_v62, %v419_v2  ;;  %v2572_v8 = vcombine.low %v403_v62, %v419_v2  ;;  %v435_v10 = vld [vmem:[%s3089_s3 + $0x108] sm:$0xff]  ;;  %v405_v32 = vld [vmem:[%s3089_s3 + $0x18] sm:$0xff] }
 0x160   : > { %v450_v5 = vld [vmem:[%s3089_s3 + $0x180] sm:$0xff]  ;;  %v451_v11 = vld [vmem:[%s3089_s3 + $0x188] sm:$0xff]  ;;  %v421_v33 = vld [vmem:[%s3089_s3 + $0x98] sm:$0xff]  ;;  %v2575_v36 = vcombine.high %v404_v30, %v420_v31  ;;  %v2574_v44 = vcombine.low %v404_v30, %v420_v31 }
 0x161   : > { %v2603_v9 = vcombine.high %v434_v4, %v450_v5  ;;  %v466_v12 = vld [vmem:[%s3089_s3 + $0x200] sm:$0xff]  ;;  %1174 = vmatprep.subr.bf16.mxu0 %v2571_v63  ;;  %v2605_v13 = vcombine.high %v435_v10, %v451_v11  ;;  %v467_v15 = vld [vmem:[%s3089_s3 + $0x208] sm:$0xff]  ;;  %1215 = vmatprep.subr.bf16.mxu1 %v2573_v7  ;;  %v2602_v17 = vcombine.low %v434_v4, %v450_v5  ;;  %v436_v38 = vld [vmem:[%s3089_s3 + $0x110] sm:$0xff] }
 0x162   : > { %v482_v14 = vld [vmem:[%s3089_s3 + $0x280] sm:$0xff]  ;;  %v483_v16 = vld [vmem:[%s3089_s3 + $0x288] sm:$0xff]  ;;  %1175 = vmatpush1.bf16.msra.mxu0 %v2570_v3  ;;  %1216 = vmatpush1.bf16.msra.mxu1 %v2572_v8  ;;  %v2604_v18 = vcombine.low %v435_v10, %v451_v11  ;;  %v2577_v37 = vcombine.high %v405_v32, %v421_v33  ;;  %v452_v40 = vld [vmem:[%s3089_s3 + $0x190] sm:$0xff]  ;;  %v2576_v45 = vcombine.low %v405_v32, %v421_v33 }
 0x163   : > { %1176 = vmatprep.subr.bf16.mxu0 %v2603_v9  ;;  %v2635_v19 = vcombine.high %v466_v12, %v482_v14  ;;  %1217 = vmatprep.subr.bf16.mxu1 %v2605_v13  ;;  %v2637_v20 = vcombine.high %v467_v15, %v483_v16  ;;  %v498_v21 = vld [vmem:[%s3089_s3 + $0x300] sm:$0xff]  ;;  %v499_v23 = vld [vmem:[%s3089_s3 + $0x308] sm:$0xff]  ;;  %v2634_v25 = vcombine.low %v466_v12, %v482_v14  ;;  %v437_v41 = vld [vmem:[%s3089_s3 + $0x118] sm:$0xff] }
 0x164   : > { %v514_v22 = vld [vmem:[%s3089_s3 + $0x380] sm:$0xff]  ;;  %v515_v24 = vld [vmem:[%s3089_s3 + $0x388] sm:$0xff]  ;;  %v2636_v26 = vcombine.low %v467_v15, %v483_v16  ;;  %v453_v42 = vld [vmem:[%s3089_s3 + $0x198] sm:$0xff]  ;;  %v2607_v46 = vcombine.high %v436_v38, %v452_v40  ;;  %v2606_v52 = vcombine.low %v436_v38, %v452_v40 }
 0x165   : > { %v2667_v27 = vcombine.high %v498_v21, %v514_v22  ;;  %v2669_v29 = vcombine.high %v499_v23, %v515_v24  ;;  %v2666_v34 = vcombine.low %v498_v21, %v514_v22  ;;  %v2668_v35 = vcombine.low %v499_v23, %v515_v24  ;;  %v3313_v43 = vld [vmem:[#allocation2] sm:$0xff]  ;;  %v468_v48 = vld [vmem:[%s3089_s3 + $0x210] sm:$0xff]  ;;  %v406_v0 = vld [vmem:[%s3089_s3 + $0x20] sm:$0xff] }
 0x166   : > { %1177 = vmatpush1.bf16.msra.mxu0 %v2602_v17  ;;  %1218 = vmatpush1.bf16.msra.mxu1 %v2604_v18  ;;  %v2609_v47 = vcombine.high %v437_v41, %v453_v42  ;;  %v484_v49 = vld [vmem:[%s3089_s3 + $0x290] sm:$0xff]  ;;  %v469_v50 = vld [vmem:[%s3089_s3 + $0x218] sm:$0xff]  ;;  %v2608_v28 = vcombine.low %v437_v41, %v453_v42  ;;  %v422_v1 = vld [vmem:[%s3089_s3 + $0xa0] sm:$0xff] }
 0x167   : > { %1178 = vmatprep.subr.bf16.mxu0 %v2635_v19  ;;  %1219 = vmatprep.subr.bf16.mxu1 %v2637_v20  ;;  %v485_v51 = vld [vmem:[%s3089_s3 + $0x298] sm:$0xff]  ;;  %v2639_v53 = vcombine.high %v468_v48, %v484_v49  ;;  %v500_v55 = vld [vmem:[%s3089_s3 + $0x310] sm:$0xff]  ;;  %v2638_v58 = vcombine.low %v468_v48, %v484_v49  ;;  %v407_v62 = vld [vmem:[%s3089_s3 + $0x28] sm:$0xff]  ;;  %v2579_v4 = vcombine.high %v406_v0, %v422_v1 }
 0x168   : > { %v2641_v54 = vcombine.high %v469_v50, %v485_v51  ;;  %v516_v56 = vld [vmem:[%s3089_s3 + $0x390] sm:$0xff]  ;;  %v501_v39 = vld [vmem:[%s3089_s3 + $0x318] sm:$0xff]  ;;  %v2640_v59 = vcombine.low %v469_v50, %v485_v51  ;;  %v423_v63 = vld [vmem:[%s3089_s3 + $0xa8] sm:$0xff]  ;;  %v2578_v11 = vcombine.low %v406_v0, %v422_v1 }
 0x169   : > { %v517_v57 = vld [vmem:[%s3089_s3 + $0x398] sm:$0xff]  ;;  %v2671_v60 = vcombine.high %v500_v55, %v516_v56  ;;  %v2670_v2 = vcombine.low %v500_v55, %v516_v56  ;;  %v2581_v5 = vcombine.high %v407_v62, %v423_v63  ;;  %v438_v7 = vld [vmem:[%s3089_s3 + $0x120] sm:$0xff]  ;;  %v439_v9 = vld [vmem:[%s3089_s3 + $0x128] sm:$0xff]  ;;  %v2580_v12 = vcombine.low %v407_v62, %v423_v63 }
 0x16a   : > { %1179 = vmatpush1.bf16.msra.mxu0 %v2634_v25  ;;  %1220 = vmatpush1.bf16.msra.mxu1 %v2636_v26  ;;  %v2673_v61 = vcombine.high %v501_v39, %v517_v57  ;;  %v2672_v3 = vcombine.low %v501_v39, %v517_v57  ;;  %v454_v8 = vld [vmem:[%s3089_s3 + $0x1a0] sm:$0xff]  ;;  %v455_v10 = vld [vmem:[%s3089_s3 + $0x1a8] sm:$0xff]  ;;  %v408_v32 = vld [vmem:[%s3089_s3 + $0x30] sm:$0xff] }
 0x16b   : > { %1180 = vmatprep.subr.bf16.mxu0 %v2667_v27  ;;  %1221 = vmatprep.subr.bf16.mxu1 %v2669_v29  ;;  %v2611_v13 = vcombine.high %v438_v7, %v454_v8  ;;  %v2613_v14 = vcombine.high %v439_v9, %v455_v10  ;;  %v470_v15 = vld [vmem:[%s3089_s3 + $0x220] sm:$0xff]  ;;  %v471_v17 = vld [vmem:[%s3089_s3 + $0x228] sm:$0xff]  ;;  %v2610_v19 = vcombine.low %v438_v7, %v454_v8  ;;  %v424_v33 = vld [vmem:[%s3089_s3 + $0xb0] sm:$0xff] }
 0x16c   : > { %v486_v16 = vld [vmem:[%s3089_s3 + $0x2a0] sm:$0xff]  ;;  %v487_v18 = vld [vmem:[%s3089_s3 + $0x2a8] sm:$0xff]  ;;  %v2612_v20 = vcombine.low %v439_v9, %v455_v10  ;;  %v2583_v38 = vcombine.high %v408_v32, %v424_v33  ;;  %v440_v41 = vld [vmem:[%s3089_s3 + $0x130] sm:$0xff] }
 0x16d   : > { %v2643_v21 = vcombine.high %v470_v15, %v486_v16  ;;  %v2645_v22 = vcombine.high %v471_v17, %v487_v18  ;;  %v502_v23 = vld [vmem:[%s3089_s3 + $0x320] sm:$0xff]  ;;  %v503_v25 = vld [vmem:[%s3089_s3 + $0x328] sm:$0xff]  ;;  %v2642_v27 = vcombine.low %v470_v15, %v486_v16  ;;  %v2644_v29 = vcombine.low %v471_v17, %v487_v18  ;;  %v456_v42 = vld [vmem:[%s3089_s3 + $0x1b0] sm:$0xff] }
 0x16e   : > { %1181 = vmatpush1.bf16.msra.mxu0 %v2666_v34  ;;  %1222 = vmatpush1.bf16.msra.mxu1 %v2668_v35  ;;  %v518_v24 = vld [vmem:[%s3089_s3 + $0x3a0] sm:$0xff]  ;;  %v519_v26 = vld [vmem:[%s3089_s3 + $0x3a8] sm:$0xff]  ;;  %v409_v34 = vld [vmem:[%s3089_s3 + $0x38] sm:$0xff]  ;;  %v2615_v48 = vcombine.high %v440_v41, %v456_v42 }
 0x16f   : > { %1256 = vmatprep.subr.bf16.mxu0 %v2575_v36  ;;  %1297 = vmatprep.subr.bf16.mxu1 %v2577_v37  ;;  %v2675_v30 = vcombine.high %v502_v23, %v518_v24  ;;  %v2677_v31 = vcombine.high %v503_v25, %v519_v26  ;;  %v425_v35 = vld [vmem:[%s3089_s3 + $0xb8] sm:$0xff]  ;;  %v2674_v36 = vcombine.low %v502_v23, %v518_v24  ;;  %v472_v50 = vld [vmem:[%s3089_s3 + $0x230] sm:$0xff]  ;;  %v410_v62 = vld [vmem:[%s3089_s3 + $0x40] sm:$0xff] }
 0x170   : > { %v2676_v37 = vcombine.low %v503_v25, %v519_v26  ;;  %v2585_v40 = vcombine.high %v409_v34, %v425_v35  ;;  %v488_v51 = vld [vmem:[%s3089_s3 + $0x2b0] sm:$0xff]  ;;  %v426_v63 = vld [vmem:[%s3089_s3 + $0xc0] sm:$0xff] }
 0x171   : > { %2698 = vmatmul.mubr.msk.bf16.vlgmr.msra.gmra.mrb[0].mxu0 %vm1170_vm10, %v3313_v43  ;;  %2699 = vmatmul.mubr.msk.bf16.vlgmr.msra.gmra.mrb[0].mxu1 %vm1170_vm10, %v3313_v43  ;;  %v2647_v55 = vcombine.high %v472_v50, %v488_v51  ;;  %v504_v39 = vld [vmem:[%s3089_s3 + $0x330] sm:$0xff]  ;;  %v2587_v7 = vcombine.high %v410_v62, %v426_v63  ;;  %v442_v9 = vld [vmem:[%s3089_s3 + $0x140] sm:$0xff] }
 0x172   : > { %1257 = vmatpush1.bf16.msra.mxu0 %v2574_v44  ;;  %1298 = vmatpush1.bf16.msra.mxu1 %v2576_v45  ;;  %v441_v44 = vld [vmem:[%s3089_s3 + $0x138] sm:$0xff]  ;;  %v520_v57 = vld [vmem:[%s3089_s3 + $0x3b0] sm:$0xff]  ;;  %v458_v10 = vld [vmem:[%s3089_s3 + $0x1c0] sm:$0xff] }
 0x173   : > { %1258 = vmatprep.subr.bf16.mxu0 %v2607_v46  ;;  %1299 = vmatprep.subr.bf16.mxu1 %v2609_v47  ;;  %v457_v45 = vld [vmem:[%s3089_s3 + $0x1b8] sm:$0xff]  ;;  %v2582_v46 = vcombine.low %v408_v32, %v424_v33  ;;  %v2584_v47 = vcombine.low %v409_v34, %v425_v35  ;;  %v2679_v0 = vcombine.high %v504_v39, %v520_v57  ;;  %v474_v17 = vld [vmem:[%s3089_s3 + $0x240] sm:$0xff]  ;;  %v412_v34 = vld [vmem:[%s3089_s3 + $0x50] sm:$0xff] }
 0x174   : > { %1288 = vmatprep.mubr.bf16.mxu0 %v2944_v6  ;;  %1329 = vmatprep.mubr.bf16.mxu1 %v2944_v6  ;;  %v2617_v49 = vcombine.high %v441_v44, %v457_v45  ;;  %v2619_v15 = vcombine.high %v442_v9, %v458_v10  ;;  %v490_v18 = vld [vmem:[%s3089_s3 + $0x2c0] sm:$0xff]  ;;  %v428_v35 = vld [vmem:[%s3089_s3 + $0xd0] sm:$0xff] }
 0x175   : > { %v2651_v23 = vcombine.high %v474_v17, %v490_v18  ;;  %v506_v25 = vld [vmem:[%s3089_s3 + $0x340] sm:$0xff] }
 0x176   : > { %1259 = vmatpush1.bf16.msra.mxu0 %v2606_v52  ;;  %1300 = vmatpush1.bf16.msra.mxu1 %v2608_v28  ;;  %v473_v52 = vld [vmem:[%s3089_s3 + $0x238] sm:$0xff]  ;;  %v522_v26 = vld [vmem:[%s3089_s3 + $0x3c0] sm:$0xff] }
 0x177   : > { %1260 = vmatprep.subr.bf16.mxu0 %v2639_v53  ;;  %1301 = vmatprep.subr.bf16.mxu1 %v2641_v54  ;;  %v489_v28 = vld [vmem:[%s3089_s3 + $0x2b8] sm:$0xff]  ;;  %v2614_v53 = vcombine.low %v440_v41, %v456_v42  ;;  %v2616_v54 = vcombine.low %v441_v44, %v457_v45  ;;  %v2683_v32 = vcombine.high %v506_v25, %v522_v26  ;;  %v444_v44 = vld [vmem:[%s3089_s3 + $0x150] sm:$0xff] }
 0x178   : > { %v2649_v56 = vcombine.high %v473_v52, %v489_v28  ;;  %v2591_v41 = vcombine.high %v412_v34, %v428_v35  ;;  %v460_v45 = vld [vmem:[%s3089_s3 + $0x1d0] sm:$0xff] }
 0x17a   : > { %1261 = vmatpush1.bf16.msra.mxu0 %v2638_v58  ;;  %1302 = vmatpush1.bf16.msra.mxu1 %v2640_v59  ;;  %v505_v58 = vld [vmem:[%s3089_s3 + $0x338] sm:$0xff] }
 0x17b   : > { %1262 = vmatprep.subr.bf16.mxu0 %v2671_v60  ;;  %1303 = vmatprep.subr.bf16.mxu1 %v2673_v61  ;;  %v521_v59 = vld [vmem:[%s3089_s3 + $0x3b8] sm:$0xff]  ;;  %v2646_v60 = vcombine.low %v472_v50, %v488_v51  ;;  %v2648_v61 = vcombine.low %v473_v52, %v489_v28  ;;  %v2623_v50 = vcombine.high %v444_v44, %v460_v45  ;;  %v476_v52 = vld [vmem:[%s3089_s3 + $0x250] sm:$0xff] }
 0x17c   : > { %v2681_v1 = vcombine.high %v505_v58, %v521_v59  ;;  %v492_v28 = vld [vmem:[%s3089_s3 + $0x2d0] sm:$0xff] }
 0x17e   : > { %1263 = vmatpush1.bf16.msra.mxu0 %v2670_v2  ;;  %1304 = vmatpush1.bf16.msra.mxu1 %v2672_v3  ;;  %v411_v2 = vld [vmem:[%s3089_s3 + $0x48] sm:$0xff] }
 0x17f   : > { %1338 = vmatprep.subr.bf16.mxu0 %v2579_v4  ;;  %1379 = vmatprep.subr.bf16.mxu1 %v2581_v5  ;;  %v427_v3 = vld [vmem:[%s3089_s3 + $0xc8] sm:$0xff]  ;;  %v2678_v4 = vcombine.low %v504_v39, %v520_v57  ;;  %v2680_v5 = vcombine.low %v505_v58, %v521_v59  ;;  %v2655_v39 = vcombine.high %v476_v52, %v492_v28  ;;  %v508_v58 = vld [vmem:[%s3089_s3 + $0x350] sm:$0xff] }
 0x180   : > { %v2589_v8 = vcombine.high %v411_v2, %v427_v3  ;;  %v524_v59 = vld [vmem:[%s3089_s3 + $0x3d0] sm:$0xff] }
 0x181   : > { %2700 = vmatmul.mubr.msk.bf16.vlgmr.msra.gmra.mrb[4].mxu0 %vm1170_vm10, %v3313_v43  ;;  %2701 = vmatmul.mubr.msk.bf16.vlgmr.msra.gmra.mrb[4].mxu1 %vm1170_vm10, %v3313_v43 }
 0x182   : > { %1339 = vmatpush1.bf16.msra.mxu0 %v2578_v11  ;;  %1380 = vmatpush1.bf16.msra.mxu1 %v2580_v12  ;;  %v443_v11 = vld [vmem:[%s3089_s3 + $0x148] sm:$0xff] }
 0x183   : > { %1340 = vmatprep.subr.bf16.mxu0 %v2611_v13  ;;  %1381 = vmatprep.subr.bf16.mxu1 %v2613_v14  ;;  %v459_v12 = vld [vmem:[%s3089_s3 + $0x1c8] sm:$0xff]  ;;  %v2586_v13 = vcombine.low %v410_v62, %v426_v63  ;;  %v2588_v14 = vcombine.low %v411_v2, %v427_v3  ;;  %v2687_v62 = vcombine.high %v508_v58, %v524_v59  ;;  %v414_v2 = vld [vmem:[%s3089_s3 + $0x60] sm:$0xff] }
 0x184   : > { %1370 = vmatprep.mubr.bf16.mxu0 %v2944_v6  ;;  %1411 = vmatprep.mubr.bf16.mxu1 %v2944_v6  ;;  %v2621_v16 = vcombine.high %v443_v11, %v459_v12  ;;  %v430_v3 = vld [vmem:[%s3089_s3 + $0xe0] sm:$0xff] }
 0x186   : > { %1341 = vmatpush1.bf16.msra.mxu0 %v2610_v19  ;;  %1382 = vmatpush1.bf16.msra.mxu1 %v2612_v20  ;;  %v475_v19 = vld [vmem:[%s3089_s3 + $0x248] sm:$0xff] }
 0x187   : > { %1342 = vmatprep.subr.bf16.mxu0 %v2643_v21  ;;  %1383 = vmatprep.subr.bf16.mxu1 %v2645_v22  ;;  %v491_v20 = vld [vmem:[%s3089_s3 + $0x2c8] sm:$0xff]  ;;  %v2618_v21 = vcombine.low %v442_v9, %v458_v10  ;;  %v2620_v22 = vcombine.low %v443_v11, %v459_v12  ;;  %v2595_v9 = vcombine.high %v414_v2, %v430_v3  ;;  %v446_v11 = vld [vmem:[%s3089_s3 + $0x160] sm:$0xff] }
 0x188   : > { %v2653_v24 = vcombine.high %v475_v19, %v491_v20  ;;  %v462_v12 = vld [vmem:[%s3089_s3 + $0x1e0] sm:$0xff] }
 0x18a   : > { %1343 = vmatpush1.bf16.msra.mxu0 %v2642_v27  ;;  %1384 = vmatpush1.bf16.msra.mxu1 %v2644_v29  ;;  %v507_v27 = vld [vmem:[%s3089_s3 + $0x348] sm:$0xff] }
 0x18b   : > { %1344 = vmatprep.subr.bf16.mxu0 %v2675_v30  ;;  %1385 = vmatprep.subr.bf16.mxu1 %v2677_v31  ;;  %v523_v29 = vld [vmem:[%s3089_s3 + $0x3c8] sm:$0xff]  ;;  %v2650_v30 = vcombine.low %v474_v17, %v490_v18  ;;  %v2652_v31 = vcombine.low %v475_v19, %v491_v20  ;;  %v2627_v17 = vcombine.high %v446_v11, %v462_v12  ;;  %v478_v19 = vld [vmem:[%s3089_s3 + $0x260] sm:$0xff] }
 0x18c   : > { %v2685_v33 = vcombine.high %v507_v27, %v523_v29  ;;  %v494_v20 = vld [vmem:[%s3089_s3 + $0x2e0] sm:$0xff] }
 0x18e   : > { %1345 = vmatpush1.bf16.msra.mxu0 %v2674_v36  ;;  %1386 = vmatpush1.bf16.msra.mxu1 %v2676_v37  ;;  %v413_v36 = vld [vmem:[%s3089_s3 + $0x58] sm:$0xff] }
 0x18f   : > { %1420 = vmatprep.subr.bf16.mxu0 %v2583_v38  ;;  %1461 = vmatprep.subr.bf16.mxu1 %v2585_v40  ;;  %v429_v37 = vld [vmem:[%s3089_s3 + $0xd8] sm:$0xff]  ;;  %v2682_v38 = vcombine.low %v506_v25, %v522_v26  ;;  %v2684_v40 = vcombine.low %v507_v27, %v523_v29  ;;  %v2659_v25 = vcombine.high %v478_v19, %v494_v20  ;;  %v510_v27 = vld [vmem:[%s3089_s3 + $0x360] sm:$0xff] }
 0x190   : > { %v2593_v42 = vcombine.high %v413_v36, %v429_v37  ;;  %v526_v29 = vld [vmem:[%s3089_s3 + $0x3e0] sm:$0xff] }
 0x191   : > { %2702 = vmatmul.mubr.msk.bf16.vlgmr.msra.gmra.mrb[8].mxu0 %vm1170_vm10, %v3313_v43  ;;  %2703 = vmatmul.mubr.msk.bf16.vlgmr.msra.gmra.mrb[8].mxu1 %vm1170_vm10, %v3313_v43 }
 0x192   : > { %1421 = vmatpush1.bf16.msra.mxu0 %v2582_v46  ;;  %1462 = vmatpush1.bf16.msra.mxu1 %v2584_v47  ;;  %v445_v46 = vld [vmem:[%s3089_s3 + $0x158] sm:$0xff] }
 0x193   : > { %1422 = vmatprep.subr.bf16.mxu0 %v2615_v48  ;;  %1463 = vmatprep.subr.bf16.mxu1 %v2617_v49  ;;  %v461_v47 = vld [vmem:[%s3089_s3 + $0x1d8] sm:$0xff]  ;;  %v2590_v48 = vcombine.low %v412_v34, %v428_v35  ;;  %v2592_v49 = vcombine.low %v413_v36, %v429_v37  ;;  %v2691_v34 = vcombine.high %v510_v27, %v526_v29  ;;  %v416_v36 = vld [vmem:[%s3089_s3 + $0x70] sm:$0xff] }
 0x194   : > { %1452 = vmatprep.mubr.bf16.mxu0 %v2944_v6  ;;  %1493 = vmatprep.mubr.bf16.mxu1 %v2944_v6  ;;  %v2625_v51 = vcombine.high %v445_v46, %v461_v47  ;;  %v432_v37 = vld [vmem:[%s3089_s3 + $0xf0] sm:$0xff] }
 0x196   : > { %1423 = vmatpush1.bf16.msra.mxu0 %v2614_v53  ;;  %1464 = vmatpush1.bf16.msra.mxu1 %v2616_v54  ;;  %v477_v53 = vld [vmem:[%s3089_s3 + $0x258] sm:$0xff] }
 0x197   : > { %1424 = vmatprep.subr.bf16.mxu0 %v2647_v55  ;;  %1465 = vmatprep.subr.bf16.mxu1 %v2649_v56  ;;  %v493_v54 = vld [vmem:[%s3089_s3 + $0x2d8] sm:$0xff]  ;;  %v2622_v55 = vcombine.low %v444_v44, %v460_v45  ;;  %v2624_v56 = vcombine.low %v445_v46, %v461_v47  ;;  %v2599_v44 = vcombine.high %v416_v36, %v432_v37  ;;  %v448_v46 = vld [vmem:[%s3089_s3 + $0x170] sm:$0xff] }
 0x198   : > { %v2657_v57 = vcombine.high %v477_v53, %v493_v54  ;;  %v464_v47 = vld [vmem:[%s3089_s3 + $0x1f0] sm:$0xff] }
 0x19a   : > { %1425 = vmatpush1.bf16.msra.mxu0 %v2646_v60  ;;  %1466 = vmatpush1.bf16.msra.mxu1 %v2648_v61  ;;  %v509_v60 = vld [vmem:[%s3089_s3 + $0x358] sm:$0xff] }
 0x19b   : > { %1426 = vmatprep.subr.bf16.mxu0 %v2679_v0  ;;  %1467 = vmatprep.subr.bf16.mxu1 %v2681_v1  ;;  %v525_v61 = vld [vmem:[%s3089_s3 + $0x3d8] sm:$0xff]  ;;  %v2654_v0 = vcombine.low %v476_v52, %v492_v28  ;;  %v2656_v1 = vcombine.low %v477_v53, %v493_v54  ;;  %v2631_v52 = vcombine.high %v448_v46, %v464_v47  ;;  %v480_v53 = vld [vmem:[%s3089_s3 + $0x270] sm:$0xff] }
 0x19c   : > { %v2689_v63 = vcombine.high %v509_v60, %v525_v61  ;;  %v496_v54 = vld [vmem:[%s3089_s3 + $0x2f0] sm:$0xff] }
 0x19e   : > { %1427 = vmatpush1.bf16.msra.mxu0 %v2678_v4  ;;  %1468 = vmatpush1.bf16.msra.mxu1 %v2680_v5  ;;  %v415_v4 = vld [vmem:[%s3089_s3 + $0x68] sm:$0xff] }
 0x19f   : > { %1502 = vmatprep.subr.bf16.mxu0 %v2587_v7  ;;  %1543 = vmatprep.subr.bf16.mxu1 %v2589_v8  ;;  %v431_v5 = vld [vmem:[%s3089_s3 + $0xe8] sm:$0xff]  ;;  %v2686_v7 = vcombine.low %v508_v58, %v524_v59  ;;  %v2688_v8 = vcombine.low %v509_v60, %v525_v61  ;;  %v2663_v58 = vcombine.high %v480_v53, %v496_v54  ;;  %v512_v60 = vld [vmem:[%s3089_s3 + $0x370] sm:$0xff] }
 0x1a0   : > { %v2597_v10 = vcombine.high %v415_v4, %v431_v5  ;;  %v528_v61 = vld [vmem:[%s3089_s3 + $0x3f0] sm:$0xff] }
 0x1a1   : > { %2704 = vmatmul.mubr.msk.bf16.vlgmr.msra.gmra.mrb[12].mxu0 %vm1170_vm10, %v3313_v43  ;;  %2705 = vmatmul.mubr.msk.bf16.vlgmr.msra.gmra.mrb[12].mxu1 %vm1170_vm10, %v3313_v43 }
 0x1a2   : > { %1503 = vmatpush1.bf16.msra.mxu0 %v2586_v13  ;;  %1544 = vmatpush1.bf16.msra.mxu1 %v2588_v14  ;;  %v447_v13 = vld [vmem:[%s3089_s3 + $0x168] sm:$0xff] }
 0x1a3   : > { %1504 = vmatprep.subr.bf16.mxu0 %v2619_v15  ;;  %1545 = vmatprep.subr.bf16.mxu1 %v2621_v16  ;;  %v463_v14 = vld [vmem:[%s3089_s3 + $0x1e8] sm:$0xff]  ;;  %v2594_v15 = vcombine.low %v414_v2, %v430_v3  ;;  %v2596_v16 = vcombine.low %v415_v4, %v431_v5  ;;  %v2695_v2 = vcombine.high %v512_v60, %v528_v61 }
 0x1a4   : > { %1534 = vmatprep.mubr.bf16.mxu0 %v2944_v6  ;;  %1575 = vmatprep.mubr.bf16.mxu1 %v2944_v6  ;;  %v2629_v18 = vcombine.high %v447_v13, %v463_v14  ;;  %v2694_v4 = vcombine.low %v512_v60, %v528_v61 }
 0x1a6   : > { %1505 = vmatpush1.bf16.msra.mxu0 %v2618_v21  ;;  %1546 = vmatpush1.bf16.msra.mxu1 %v2620_v22  ;;  %v479_v21 = vld [vmem:[%s3089_s3 + $0x268] sm:$0xff] }
 0x1a7   : > { %1506 = vmatprep.subr.bf16.mxu0 %v2651_v23  ;;  %1547 = vmatprep.subr.bf16.mxu1 %v2653_v24  ;;  %v495_v22 = vld [vmem:[%s3089_s3 + $0x2e8] sm:$0xff]  ;;  %v2626_v23 = vcombine.low %v446_v11, %v462_v12  ;;  %v2628_v24 = vcombine.low %v447_v13, %v463_v14 }
 0x1a8   : > { %v2661_v26 = vcombine.high %v479_v21, %v495_v22 }
 0x1aa   : > { %1507 = vmatpush1.bf16.msra.mxu0 %v2650_v30  ;;  %1548 = vmatpush1.bf16.msra.mxu1 %v2652_v31  ;;  %v511_v30 = vld [vmem:[%s3089_s3 + $0x368] sm:$0xff] }
 0x1ab   : > { %1508 = vmatprep.subr.bf16.mxu0 %v2683_v32  ;;  %1549 = vmatprep.subr.bf16.mxu1 %v2685_v33  ;;  %v527_v31 = vld [vmem:[%s3089_s3 + $0x3e8] sm:$0xff]  ;;  %v2658_v32 = vcombine.low %v478_v19, %v494_v20  ;;  %v2660_v33 = vcombine.low %v479_v21, %v495_v22 }
 0x1ac   : > { %v2693_v35 = vcombine.high %v511_v30, %v527_v31 }
 0x1ae   : > { %1509 = vmatpush1.bf16.msra.mxu0 %v2682_v38  ;;  %1550 = vmatpush1.bf16.msra.mxu1 %v2684_v40  ;;  %v417_v38 = vld [vmem:[%s3089_s3 + $0x78] sm:$0xff] }
 0x1af   : > { %1584 = vmatprep.subr.bf16.mxu0 %v2591_v41  ;;  %1625 = vmatprep.subr.bf16.mxu1 %v2593_v42  ;;  %v433_v40 = vld [vmem:[%s3089_s3 + $0xf8] sm:$0xff]  ;;  %v2690_v41 = vcombine.low %v510_v27, %v526_v29  ;;  %v2692_v42 = vcombine.low %v511_v30, %v527_v31 }
 0x1b0   : > { %v2601_v45 = vcombine.high %v417_v38, %v433_v40 }
 0x1b1   : > { %2706 = vmatmul.mubr.msk.bf16.vlgmr.msra.gmra.mrb[16].mxu0 %vm1170_vm10, %v3313_v43  ;;  %2707 = vmatmul.mubr.msk.bf16.vlgmr.msra.gmra.mrb[16].mxu1 %vm1170_vm10, %v3313_v43 }
 0x1b2   : > { %1585 = vmatpush1.bf16.msra.mxu0 %v2590_v48  ;;  %1626 = vmatpush1.bf16.msra.mxu1 %v2592_v49  ;;  %v449_v48 = vld [vmem:[%s3089_s3 + $0x178] sm:$0xff] }
 0x1b3   : > { %1586 = vmatprep.subr.bf16.mxu0 %v2623_v50  ;;  %1627 = vmatprep.subr.bf16.mxu1 %v2625_v51  ;;  %v465_v49 = vld [vmem:[%s3089_s3 + $0x1f8] sm:$0xff]  ;;  %v2598_v50 = vcombine.low %v416_v36, %v432_v37  ;;  %v2600_v51 = vcombine.low %v417_v38, %v433_v40 }
 0x1b4   : > { %1616 = vmatprep.mubr.bf16.mxu0 %v2944_v6  ;;  %1657 = vmatprep.mubr.bf16.mxu1 %v2944_v6  ;;  %v2633_v28 = vcombine.high %v449_v48, %v465_v49 }
 0x1b6   : > { %1587 = vmatpush1.bf16.msra.mxu0 %v2622_v55  ;;  %1628 = vmatpush1.bf16.msra.mxu1 %v2624_v56  ;;  %v481_v55 = vld [vmem:[%s3089_s3 + $0x278] sm:$0xff] }
 0x1b7   : > { %1588 = vmatprep.subr.bf16.mxu0 %v2655_v39  ;;  %1629 = vmatprep.subr.bf16.mxu1 %v2657_v57  ;;  %v497_v56 = vld [vmem:[%s3089_s3 + $0x2f8] sm:$0xff]  ;;  %v2630_v39 = vcombine.low %v448_v46, %v464_v47  ;;  %v2632_v57 = vcombine.low %v449_v48, %v465_v49 }
 0x1b8   : > { %v2665_v59 = vcombine.high %v481_v55, %v497_v56 }
 0x1ba   : > { %1589 = vmatpush1.bf16.msra.mxu0 %v2654_v0  ;;  %1630 = vmatpush1.bf16.msra.mxu1 %v2656_v1  ;;  %v513_v0 = vld [vmem:[%s3089_s3 + $0x378] sm:$0xff] }
 0x1bb   : > { %1590 = vmatprep.subr.bf16.mxu0 %v2687_v62  ;;  %1631 = vmatprep.subr.bf16.mxu1 %v2689_v63  ;;  %v529_v1 = vld [vmem:[%s3089_s3 + $0x3f8] sm:$0xff]  ;;  %v2662_v62 = vcombine.low %v480_v53, %v496_v54  ;;  %v2664_v63 = vcombine.low %v481_v55, %v497_v56 }
 0x1bc   : > { %v2697_v3 = vcombine.high %v513_v0, %v529_v1  ;;  %v2696_v5 = vcombine.low %v513_v0, %v529_v1 }
 0x1be   : > { %1591 = vmatpush1.bf16.msra.mxu0 %v2686_v7  ;;  %1632 = vmatpush1.bf16.msra.mxu1 %v2688_v8  ;;  %v2001_v8 = vlaneseq }
 0x1bf   : > { %1666 = vmatprep.subr.bf16.mxu0 %v2595_v9  ;;  %1707 = vmatprep.subr.bf16.mxu1 %v2597_v10 }
 0x1c0   : > { %v3465_v11 = vshrl.u32 %v2001_v8, 7 }
 0x1c1   : > { %2708 = vmatmul.mubr.msk.bf16.vlgmr.msra.gmra.mrb[20].mxu0 %vm1170_vm10, %v3313_v43  ;;  %2709 = vmatmul.mubr.msk.bf16.vlgmr.msra.gmra.mrb[20].mxu1 %vm1170_vm10, %v3313_v43 }
 0x1c2   : > { %1667 = vmatpush1.bf16.msra.mxu0 %v2594_v15  ;;  %1708 = vmatpush1.bf16.msra.mxu1 %v2596_v16 }
 0x1c3   : > { %1668 = vmatprep.subr.bf16.mxu0 %v2627_v17  ;;  %1709 = vmatprep.subr.bf16.mxu1 %v2629_v18 }
 0x1c4   : > { %1698 = vmatprep.mubr.bf16.mxu0 %v2944_v6  ;;  %1739 = vmatprep.mubr.bf16.mxu1 %v2944_v6 }
 0x1c6   : > { %1669 = vmatpush1.bf16.msra.mxu0 %v2626_v23  ;;  %1710 = vmatpush1.bf16.msra.mxu1 %v2628_v24 }
 0x1c7   : > { %1670 = vmatprep.subr.bf16.mxu0 %v2659_v25  ;;  %1711 = vmatprep.subr.bf16.mxu1 %v2661_v26 }
 0x1ca   : > { %1671 = vmatpush1.bf16.msra.mxu0 %v2658_v32  ;;  %1712 = vmatpush1.bf16.msra.mxu1 %v2660_v33 }
 0x1cb   : > { %1672 = vmatprep.subr.bf16.mxu0 %v2691_v34  ;;  %1713 = vmatprep.subr.bf16.mxu1 %v2693_v35 }
 0x1ce   : > { %1673 = vmatpush1.bf16.msra.mxu0 %v2690_v41  ;;  %1714 = vmatpush1.bf16.msra.mxu1 %v2692_v42 }
 0x1cf   : > { %1748 = vmatprep.subr.bf16.mxu0 %v2599_v44  ;;  %1789 = vmatprep.subr.bf16.mxu1 %v2601_v45 }
 0x1d1   : > { %2710 = vmatmul.mubr.msk.bf16.vlgmr.msra.gmra.mrb[24].mxu0 %vm1170_vm10, %v3313_v43  ;;  %2711 = vmatmul.mubr.msk.bf16.vlgmr.msra.gmra.mrb[24].mxu1 %vm1170_vm10, %v3313_v43 }
 0x1d2   : > { %1749 = vmatpush1.bf16.msra.mxu0 %v2598_v50  ;;  %1790 = vmatpush1.bf16.msra.mxu1 %v2600_v51 }
 0x1d3   : > { %1750 = vmatprep.subr.bf16.mxu0 %v2631_v52  ;;  %1791 = vmatprep.subr.bf16.mxu1 %v2633_v28 }
 0x1d4   : > { %1780 = vmatprep.mubr.bf16.mxu0 %v2944_v6  ;;  %1821 = vmatprep.mubr.bf16.mxu1 %v2944_v6  ;;  %v2945_v6 = vmov 1966171168  }
 0x1d5   : > { %v1999_v7 = vunpack.c.l.s4 %v2945_v6 }
 0x1d6   : > { %1751 = vmatpush1.bf16.msra.mxu0 %v2630_v39  ;;  %1792 = vmatpush1.bf16.msra.mxu1 %v2632_v57  ;;  %v1958_v39 = vld [vmem:[#allocation3] sm:$0xff] }
 0x1d7   : > { %1752 = vmatprep.subr.bf16.mxu0 %v2663_v58  ;;  %1793 = vmatprep.subr.bf16.mxu1 %v2665_v59  ;;  %v2000_v10 = vunpack.c.0.s8 %v1999_v7 }
 0x1d9   : > { %v3468_v24 = vsub.s32 %v2000_v10, %v3465_v11 }
 0x1da   : > { %1753 = vmatpush1.bf16.msra.mxu0 %v2662_v62  ;;  %1794 = vmatpush1.bf16.msra.mxu1 %v2664_v63 }
 0x1db   : > { %1754 = vmatprep.subr.bf16.mxu0 %v2695_v2  ;;  %1795 = vmatprep.subr.bf16.mxu1 %v2697_v3 }
 0x1de   : > { %1755 = vmatpush1.bf16.msra.mxu0 %v2694_v4  ;;  %1796 = vmatpush1.bf16.msra.mxu1 %v2696_v5 }
 0x1e1   : > { %2712 = vmatmul.mubr.msk.bf16.vlgmr.msra.gmra.mrb[28].mxu0 %vm1170_vm10, %v3313_v43  ;;  %2713 = vmatmul.mubr.msk.bf16.vlgmr.msra.gmra.mrb[28].mxu1 %vm1170_vm10, %v3313_v43 }
 0x244   : > { %v1208_v9 = vpop.f32.mrb[0].mxu0  ;;  %v1249_v13 = vpop.f32.mrb[0].mxu1 }
 0x245   : > { %v1862_v12 = vrot.slane %v1208_v9, 1  ;;  %v1210_v14 = vpop.f32.mrb[1].mxu0  ;;  %v1864_v15 = vrot.slane %v1249_v13, 1  ;;  %v1251_v17 = vpop.f32.mrb[1].mxu1 }
 0x246   : > { %v1863_v16 = vrot.slane %v1210_v14, 1  ;;  %v1212_v18 = vpop.f32.mrb[2].mxu0  ;;  %v1865_v20 = vrot.slane %v1251_v17, 1  ;;  %v1253_v21 = vpop.f32.mrb[2].mxu1 }
 0x247   : > { %v1926_v19 = vadd.f32 %v1862_v12, %v1208_v9  ;;  %v1213_v22 = vpop.f32.mrb[3].mxu0  ;;  %v1928_v23 = vadd.f32 %v1864_v15, %v1249_v13  ;;  %v1254_v25 = vpop.f32.mrb[3].mxu1 }
 0x248   : > { %v1927_v43 = vadd.f32 %v1863_v16, %v1210_v14  ;;  %v1929_v26 = vadd.f32 %v1865_v20, %v1251_v17 }
 0x24a   : > { %v1994_v27 = vcombine.low %v1926_v19, %v1927_v43  ;;  %v1995_v29 = vcombine.low %v1928_v23, %v1929_v26 }
 0x24c   : > { %v2004_v30 = vrot.slane %v1994_v27, %v3468_v24  ;;  %v2011_v31 = vrot.slane %v1995_v29, %v3468_v24 }
 0x24e   : > { %v2026_v32 = vcombine.low %v2004_v30, %v2011_v31 }
 0x250   : > { %v2034_v55 = vrot.slane %v2026_v32, %v3468_v24 }
 0x254   : > { %v1290_v33 = vpop.f32.mrb[4].mxu0  ;;  %v1331_v35 = vpop.f32.mrb[4].mxu1 }
 0x255   : > { %v1866_v34 = vrot.slane %v1290_v33, 1  ;;  %v1292_v36 = vpop.f32.mrb[5].mxu0  ;;  %v1868_v37 = vrot.slane %v1331_v35, 1  ;;  %v1333_v40 = vpop.f32.mrb[5].mxu1 }
 0x256   : > { %v1867_v38 = vrot.slane %v1292_v36, 1  ;;  %v1294_v41 = vpop.f32.mrb[6].mxu0  ;;  %v1869_v44 = vrot.slane %v1333_v40, 1  ;;  %v1335_v45 = vpop.f32.mrb[6].mxu1 }
 0x257   : > { %v1930_v42 = vadd.f32 %v1866_v34, %v1290_v33  ;;  %v1295_v46 = vpop.f32.mrb[7].mxu0  ;;  %v1932_v47 = vadd.f32 %v1868_v37, %v1331_v35  ;;  %v1336_v49 = vpop.f32.mrb[7].mxu1 }
 0x258   : > { %v1931_v48 = vadd.f32 %v1867_v38, %v1292_v36  ;;  %v1933_v50 = vadd.f32 %v1869_v44, %v1333_v40 }
 0x25a   : > { %v1996_v51 = vcombine.low %v1930_v42, %v1931_v48  ;;  %v1997_v52 = vcombine.low %v1932_v47, %v1933_v50  ;;  %v1959_v42 = vld [vmem:[#allocation3 + $0x8] sm:$0xff] }
 0x25c   : > { %v2018_v28 = vrot.slane %v1996_v51, %v3468_v24  ;;  %v2025_v53 = vrot.slane %v1997_v52, %v3468_v24 }
 0x25e   : > { %v2027_v54 = vcombine.low %v2018_v28, %v2025_v53 }
 0x260   : > { %v2041_v56 = vrot.slane %v2027_v54, %v3468_v24 }
 0x262   : > { %v2042_v57 = vcombine.low %v2034_v55, %v2041_v56 }
 0x264   : > { %v1372_v58 = vpop.f32.mrb[8].mxu0  ;;  %v2194_v59 = vmin.f32 %v1958_v39, %v2042_v57  ;;  %v1413_v61 = vpop.f32.mrb[8].mxu1 }
 0x265   : > { %v1870_v60 = vrot.slane %v1372_v58, 1  ;;  %v1374_v0 = vpop.f32.mrb[9].mxu0  ;;  %v1872_v1 = vrot.slane %v1413_v61, 1  ;;  %v1415_v63 = vpop.f32.mrb[9].mxu1 }
 0x266   : > { %v1871_v62 = vrot.slane %v1374_v0, 1  ;;  %v1376_v2 = vpop.f32.mrb[10].mxu0  ;;  %2198 = vst [vmem:[#allocation3] sm:$0xff] %v2194_v59  ;;  %v1873_v4 = vrot.slane %v1415_v63, 1  ;;  %v1417_v5 = vpop.f32.mrb[10].mxu1 }
 0x267   : > { %v1934_v3 = vadd.f32 %v1870_v60, %v1372_v58  ;;  %v1377_v6 = vpop.f32.mrb[11].mxu0  ;;  %v1936_v7 = vadd.f32 %v1872_v1, %v1413_v61  ;;  %v1418_v9 = vpop.f32.mrb[11].mxu1 }
 0x268   : > { %v1935_v8 = vadd.f32 %v1871_v62, %v1374_v0  ;;  %v1937_v10 = vadd.f32 %v1873_v4, %v1415_v63 }
 0x26a   : > { %v2043_v12 = vcombine.low %v1934_v3, %v1935_v8  ;;  %v2044_v13 = vcombine.low %v1936_v7, %v1937_v10 }
 0x26c   : > { %v2053_v14 = vrot.slane %v2043_v12, %v3468_v24  ;;  %v2060_v15 = vrot.slane %v2044_v13, %v3468_v24 }
 0x26e   : > { %v2075_v16 = vcombine.low %v2053_v14, %v2060_v15 }
 0x270   : > { %v2083_v40 = vrot.slane %v2075_v16, %v3468_v24 }
 0x274   : > { %v1454_v17 = vpop.f32.mrb[12].mxu0  ;;  %v1495_v19 = vpop.f32.mrb[12].mxu1 }
 0x275   : > { %v1874_v18 = vrot.slane %v1454_v17, 1  ;;  %v1456_v20 = vpop.f32.mrb[13].mxu0  ;;  %v1876_v21 = vrot.slane %v1495_v19, 1  ;;  %v1497_v23 = vpop.f32.mrb[13].mxu1 }
 0x276   : > { %v1875_v22 = vrot.slane %v1456_v20, 1  ;;  %v1458_v43 = vpop.f32.mrb[14].mxu0  ;;  %v1877_v26 = vrot.slane %v1497_v23, 1  ;;  %v1499_v27 = vpop.f32.mrb[14].mxu1 }
 0x277   : > { %v1938_v25 = vadd.f32 %v1874_v18, %v1454_v17  ;;  %v1459_v29 = vpop.f32.mrb[15].mxu0  ;;  %v1940_v30 = vadd.f32 %v1876_v21, %v1495_v19  ;;  %v1500_v32 = vpop.f32.mrb[15].mxu1 }
 0x278   : > { %v1939_v31 = vadd.f32 %v1875_v22, %v1456_v20  ;;  %v1941_v33 = vadd.f32 %v1877_v26, %v1497_v23 }
 0x27a   : > { %v2045_v34 = vcombine.low %v1938_v25, %v1939_v31  ;;  %v2046_v35 = vcombine.low %v1940_v30, %v1941_v33  ;;  %v1960_v25 = vld [vmem:[#allocation3 + $0x10] sm:$0xff] }
 0x27c   : > { %v2067_v36 = vrot.slane %v2045_v34, %v3468_v24  ;;  %v2074_v37 = vrot.slane %v2046_v35, %v3468_v24 }
 0x27e   : > { %v2076_v38 = vcombine.low %v2067_v36, %v2074_v37 }
 0x280   : > { %v2090_v41 = vrot.slane %v2076_v38, %v3468_v24 }
 0x282   : > { %v2091_v44 = vcombine.low %v2083_v40, %v2090_v41 }
 0x284   : > { %v1536_v45 = vpop.f32.mrb[16].mxu0  ;;  %v2195_v46 = vmin.f32 %v1959_v42, %v2091_v44  ;;  %v1577_v48 = vpop.f32.mrb[16].mxu1 }
 0x285   : > { %v1878_v47 = vrot.slane %v1536_v45, 1  ;;  %v1538_v49 = vpop.f32.mrb[17].mxu0  ;;  %v1880_v50 = vrot.slane %v1577_v48, 1  ;;  %v1579_v52 = vpop.f32.mrb[17].mxu1 }
 0x286   : > { %v1879_v51 = vrot.slane %v1538_v49, 1  ;;  %v1540_v28 = vpop.f32.mrb[18].mxu0  ;;  %2199 = vst [vmem:[#allocation3 + $0x8] sm:$0xff] %v2195_v46  ;;  %v1881_v54 = vrot.slane %v1579_v52, 1  ;;  %v1581_v55 = vpop.f32.mrb[18].mxu1 }
 0x287   : > { %v1942_v53 = vadd.f32 %v1878_v47, %v1536_v45  ;;  %v1541_v56 = vpop.f32.mrb[19].mxu0  ;;  %v1944_v39 = vadd.f32 %v1880_v50, %v1577_v48  ;;  %v1582_v58 = vpop.f32.mrb[19].mxu1 }
 0x288   : > { %v1943_v57 = vadd.f32 %v1879_v51, %v1538_v49  ;;  %v1945_v59 = vadd.f32 %v1881_v54, %v1579_v52 }
 0x28a   : > { %v2092_v60 = vcombine.low %v1942_v53, %v1943_v57  ;;  %v2093_v61 = vcombine.low %v1944_v39, %v1945_v59 }
 0x28c   : > { %v2102_v0 = vrot.slane %v2092_v60, %v3468_v24  ;;  %v2109_v1 = vrot.slane %v2093_v61, %v3468_v24 }
 0x28e   : > { %v2124_v62 = vcombine.low %v2102_v0, %v2109_v1 }
 0x290   : > { %v2132_v23 = vrot.slane %v2124_v62, %v3468_v24 }
 0x294   : > { %v1618_v63 = vpop.f32.mrb[20].mxu0  ;;  %v1659_v3 = vpop.f32.mrb[20].mxu1 }
 0x295   : > { %v1882_v2 = vrot.slane %v1618_v63, 1  ;;  %v1620_v4 = vpop.f32.mrb[21].mxu0  ;;  %v1884_v5 = vrot.slane %v1659_v3, 1  ;;  %v1661_v7 = vpop.f32.mrb[21].mxu1 }
 0x296   : > { %v1883_v6 = vrot.slane %v1620_v4, 1  ;;  %v1622_v8 = vpop.f32.mrb[22].mxu0  ;;  %v1885_v10 = vrot.slane %v1661_v7, 1  ;;  %v1663_v12 = vpop.f32.mrb[22].mxu1 }
 0x297   : > { %v1946_v9 = vadd.f32 %v1882_v2, %v1618_v63  ;;  %v1623_v13 = vpop.f32.mrb[23].mxu0  ;;  %v1948_v14 = vadd.f32 %v1884_v5, %v1659_v3  ;;  %v1664_v16 = vpop.f32.mrb[23].mxu1 }
 0x298   : > { %v1947_v15 = vadd.f32 %v1883_v6, %v1620_v4  ;;  %v1949_v17 = vadd.f32 %v1885_v10, %v1661_v7  ;;  %v2206_v13 = vld [vmem:[#allocation3] sm:$0xff] (!%p2714_p8)  ;;  %v3502_v16 = vsub.s32 (!%p2714_p8), 2, %v3465_v11 }
 0x29a   : > { %v2094_v18 = vcombine.low %v1946_v9, %v1947_v15  ;;  %v2095_v19 = vcombine.low %v1948_v14, %v1949_v17  ;;  %v1961_v9 = vld [vmem:[#allocation3 + $0x18] sm:$0xff]  ;;  %v3496_v14 = vsub.s32 (!%p2714_p8), 0, %v3465_v11  ;;  %v3499_v15 = vsub.s32 (!%p2714_p8), 1, %v3465_v11  ;;  %v3504_v17 = vld [vmem:[#allocation3 + $0x8] sm:$0xff] (!%p2714_p8) }
 0x29c   : > { %v2116_v20 = vrot.slane %v2094_v18, %v3468_v24  ;;  %v2123_v21 = vrot.slane %v2095_v19, %v3468_v24  ;;  %v3510_v18 = vsub.s32 (!%p2714_p8), 4, %v3465_v11  ;;  %v3513_v19 = vsub.s32 (!%p2714_p8), 5, %v3465_v11 }
 0x29e   : > { %v2125_v22 = vcombine.low %v2116_v20, %v2123_v21  ;;  %v3516_v20 = vsub.s32 (!%p2714_p8), 6, %v3465_v11  ;;  %v2217_v21 = vrot.slane (!%p2714_p8), %v2206_v13, %v3496_v14 }
 0x2a0   : > { %v2139_v43 = vrot.slane %v2125_v22, %v3468_v24  ;;  %v3520_v22 = vsub.s32 (!%p2714_p8), 7, %v3465_v11 }
 0x2a2   : > { %v2140_v26 = vcombine.low %v2132_v23, %v2139_v43  ;;  %v2221_v43 = vrot.slane (!%p2714_p8), %v2206_v13, %v3499_v15 }
 0x2a4   : > { %v1700_v27 = vpop.f32.mrb[24].mxu0  ;;  %v2196_v29 = vmin.f32 %v1960_v25, %v2140_v26  ;;  %v1741_v31 = vpop.f32.mrb[24].mxu1  ;;  %v2225_v25 = vrot.slane (!%p2714_p8), %v2206_v13, %v3502_v16 }
 0x2a5   : > { %v1886_v30 = vrot.slane %v1700_v27, 1  ;;  %v1702_v32 = vpop.f32.mrb[25].mxu0  ;;  %v1888_v33 = vrot.slane %v1741_v31, 1  ;;  %v1743_v35 = vpop.f32.mrb[25].mxu1 }
 0x2a6   : > { %v1887_v34 = vrot.slane %v1702_v32, 1  ;;  %v1704_v36 = vpop.f32.mrb[26].mxu0  ;;  %2200 = vst [vmem:[#allocation3 + $0x10] sm:$0xff] %v2196_v29  ;;  %v1889_v38 = vrot.slane %v1743_v35, 1  ;;  %v1745_v40 = vpop.f32.mrb[26].mxu1  ;;  %v2237_v29 = vrot.slane (!%p2714_p8), %v2206_v13, %v3513_v19 }
 0x2a7   : > { %v1950_v37 = vadd.f32 %v1886_v30, %v1700_v27  ;;  %v1705_v41 = vpop.f32.mrb[27].mxu0  ;;  %v1952_v42 = vadd.f32 %v1888_v33, %v1741_v31  ;;  %v1746_v45 = vpop.f32.mrb[27].mxu1  ;;  %v2233_v27 = vrot.slane (!%p2714_p8), %v2206_v13, %v3510_v18  ;;  %v2241_v30 = vrot.slane (!%p2714_p8), %v2206_v13, %v3516_v20 }
 0x2a8   : > { %v1951_v44 = vadd.f32 %v1887_v34, %v1702_v32  ;;  %v1953_v46 = vadd.f32 %v1889_v38, %v1743_v35  ;;  %v2245_v31 = vrot.slane (!%p2714_p8), %v2206_v13, %v3520_v22  ;;  %v2253_v33 = vrot.slane (!%p2714_p8), %v3504_v17, %v3499_v15 }
 0x2a9   : > { %v2257_v34 = vrot.slane (!%p2714_p8), %v3504_v17, %v3502_v16  ;;  %v2265_v36 = vrot.slane (!%p2714_p8), %v3504_v17, %v3510_v18  ;;  %v2273_v38 = vrot.slane (!%p2714_p8), %v3504_v17, %v3516_v20  ;;  %v2277_v40 = vrot.slane (!%p2714_p8), %v3504_v17, %v3520_v22 }
 0x2aa   : > { %v2141_v47 = vcombine.low %v1950_v37, %v1951_v44  ;;  %v2142_v48 = vcombine.low %v1952_v42, %v1953_v46  ;;  %v2269_v37 = vrot.slane (!%p2714_p8), %v3504_v17, %v3513_v19 }
 0x2ac   : > { %v2151_v49 = vrot.slane %v2141_v47, %v3468_v24  ;;  %v2158_v50 = vrot.slane %v2142_v48, %v3468_v24 }
 0x2ad   : > { %v3522_v23 = vld [vmem:[#allocation3 + $0x10] sm:$0xff] (!%p2714_p8) }
 0x2ae   : > { %v2173_v51 = vcombine.low %v2151_v49, %v2158_v50  ;;  %v2281_v41 = vrot.slane (!%p2714_p8), %v3522_v23, %v3496_v14  ;;  %v2285_v42 = vrot.slane (!%p2714_p8), %v3522_v23, %v3499_v15  ;;  %v2289_v44 = vrot.slane (!%p2714_p8), %v3522_v23, %v3502_v16 }
 0x2af   : > { %v2297_v46 = vrot.slane (!%p2714_p8), %v3522_v23, %v3510_v18  ;;  %v2301_v47 = vrot.slane (!%p2714_p8), %v3522_v23, %v3513_v19  ;;  %v2305_v48 = vrot.slane (!%p2714_p8), %v3522_v23, %v3516_v20  ;;  %v2309_v49 = vrot.slane (!%p2714_p8), %v3522_v23, %v3520_v22 }
 0x2b0   : > { %v2181_v7 = vrot.slane %v2173_v51, %v3468_v24 }
 0x2b4   : > { %v1782_v52 = vpop.f32.mrb[28].mxu0  ;;  %v1823_v53 = vpop.f32.mrb[28].mxu1 }
 0x2b5   : > { %v1890_v28 = vrot.slane %v1782_v52, 1  ;;  %v1784_v54 = vpop.f32.mrb[29].mxu0  ;;  %v1892_v55 = vrot.slane %v1823_v53, 1  ;;  %v1825_v39 = vpop.f32.mrb[29].mxu1 }
 0x2b6   : > { %v1891_v56 = vrot.slane %v1784_v54, 1  ;;  %v1786_v57 = vpop.f32.mrb[30].mxu0  ;;  %v1893_v59 = vrot.slane %v1825_v39, 1  ;;  %v1827_v60 = vpop.f32.mrb[30].mxu1 }
 0x2b7   : > { %v1954_v58 = vadd.f32 %v1890_v28, %v1782_v52  ;;  %v1787_v61 = vpop.f32.mrb[31].mxu0  ;;  %v1956_v0 = vadd.f32 %v1892_v55, %v1823_v53  ;;  %v1828_v62 = vpop.f32.mrb[31].mxu1  ;;  %v2376_v57 = vsel (!%p2714_p8), %vm2374_vm11, %v2221_v43, inf  ;;  %v2379_v60 = vsel (!%p2714_p8), %vm2374_vm11, %v2233_v27, inf }
 0x2b8   : > { %v1955_v1 = vadd.f32 %v1891_v56, %v1784_v54  ;;  %v1957_v63 = vadd.f32 %v1893_v59, %v1825_v39  ;;  %v2375_v39 = vsel (!%p2714_p8), %vm2374_vm11, %v2217_v21, inf  ;;  %v2381_v61 = vsel (!%p2714_p8), %vm2374_vm11, %v2237_v29, inf }
 0x2b9   : > { %v2380_v62 = vmin.f32 (!%p2714_p8), %v2375_v39, %v2379_v60  ;;  %v2405_v21 = vsel (!%p2714_p8), %vm2374_vm11, %v2285_v42, inf  ;;  %v2411_v29 = vsel (!%p2714_p8), %vm2374_vm11, %v2297_v46, inf }
 0x2ba   : > { %v2143_v2 = vcombine.low %v1954_v58, %v1955_v1  ;;  %v2144_v3 = vcombine.low %v1956_v0, %v1957_v63  ;;  %v2377_v58 = vsel (!%p2714_p8), %vm2374_vm11, %v2225_v25, inf  ;;  %v2383_v0 = vsel (!%p2714_p8), %vm2374_vm11, %v2241_v30, inf }
 0x2bb   : > { %v2385_v1 = vsel (!%p2714_p8), %vm2374_vm11, %v2245_v31, inf  ;;  %v2382_v63 = vmin.f32 (!%p2714_p8), %v2376_v57, %v2381_v61  ;;  %v2413_v30 = vsel (!%p2714_p8), %vm2374_vm11, %v2301_v47, inf  ;;  %v2415_v31 = vsel (!%p2714_p8), %vm2374_vm11, %v2305_v48, inf }
 0x2bc   : > { %v2165_v4 = vrot.slane %v2143_v2, %v3468_v24  ;;  %v2172_v5 = vrot.slane %v2144_v3, %v3468_v24  ;;  %v2384_v2 = vmin.f32 (!%p2714_p8), %v2377_v58, %v2383_v0 }
 0x2be   : > { %v2174_v6 = vcombine.low %v2165_v4, %v2172_v5  ;;  %v2389_v5 = vsel (!%p2714_p8), %vm2374_vm11, %v2253_v33, inf }
 0x2c0   : > { %v2188_v8 = vrot.slane %v2174_v6, %v3468_v24  ;;  %2205 = sbr.rel (%p2714_p8) target bundleno = 878 (0x36e), region = 44  ;;  %v3507_v24 = vsub.s32 (!%p2714_p8), 3, %v3465_v11  ;;  %v2249_v11 = vrot.slane (!%p2714_p8), %v3504_v17, %v3496_v14  ;;  %v2391_v6 = vsel (!%p2714_p8), %vm2374_vm11, %v2257_v34, inf }
 0x2c2   : > { %v2189_v10 = vcombine.low %v2181_v7, %v2188_v8  ;;  %v2229_v26 = vrot.slane (!%p2714_p8), %v2206_v13, %v3507_v24  ;;  %v2261_v35 = vrot.slane (!%p2714_p8), %v3504_v17, %v3507_v24  ;;  %v2293_v45 = vrot.slane (!%p2714_p8), %v3522_v23, %v3507_v24 }
 0x2c3   : > { %v2387_v4 = vsel (!%p2714_p8), %vm2374_vm11, %v2249_v11, inf  ;;  %v2395_v13 = vsel (!%p2714_p8), %vm2374_vm11, %v2265_v36, inf  ;;  %v2417_v11 = vsel (!%p2714_p8), %vm2374_vm11, %v2309_v49, inf }
 0x2c4   : > { %v2197_v12 = vmin.f32 %v1961_v9, %v2189_v10  ;;  %v2378_v59 = vsel (!%p2714_p8), %vm2374_vm11, %v2229_v26, inf  ;;  %v2393_v7 = vsel (!%p2714_p8), %vm2374_vm11, %v2261_v35, inf  ;;  %v2388_v8 = vmin.f32 (!%p2714_p8), %v2380_v62, %v2387_v4 }
 0x2c5   : > { %v2386_v3 = vmin.f32 (!%p2714_p8), %v2378_v59, %v2385_v1  ;;  %v2390_v9 = vmin.f32 (!%p2714_p8), %v2382_v63, %v2389_v5  ;;  %v2392_v10 = vmin.f32 (!%p2714_p8), %v2384_v2, %v2391_v6  ;;  %v2409_v23 = vsel (!%p2714_p8), %vm2374_vm11, %v2293_v45, inf }
 0x2c6   : > { %2201 = vst [vmem:[#allocation3 + $0x18] sm:$0xff] %v2197_v12  ;;  %v2396_v17 = vmin.f32 (!%p2714_p8), %v2388_v8, %v2395_v13 }
 0x2c7   : > { %v2394_v12 = vmin.f32 %v2386_v3, %v2393_v7 }
 0x2cd   : > { %v3533_v32 = vld [vmem:[#allocation3 + $0x18] sm:$0xff] }
 0x2ce   : > { %v2313_v50 = vrot.slane %v3533_v32, %v3496_v14  ;;  %v2317_v51 = vrot.slane %v3533_v32, %v3499_v15  ;;  %v2321_v52 = vrot.slane %v3533_v32, %v3502_v16  ;;  %v2325_v28 = vrot.slane %v3533_v32, %v3507_v24 }
 0x2cf   : > { %v2329_v53 = vrot.slane %v3533_v32, %v3510_v18  ;;  %v2333_v54 = vrot.slane %v3533_v32, %v3513_v19  ;;  %v2337_v55 = vrot.slane %v3533_v32, %v3516_v20  ;;  %v2341_v56 = vrot.slane %v3533_v32, %v3520_v22 }
 0x2d0   : > { %v2397_v14 = vsel %vm2374_vm11, %v2269_v37, inf  ;;  %v2399_v15 = vsel %vm2374_vm11, %v2273_v38, inf  ;;  %v2401_v16 = vsel %vm2374_vm11, %v2277_v40, inf  ;;  %v2403_v20 = vsel %vm2374_vm11, %v2281_v41, inf }
 0x2d1   : > { %v2398_v24 = vmin.f32 %v2390_v9, %v2397_v14  ;;  %v2400_v18 = vmin.f32 %v2392_v10, %v2399_v15  ;;  %v2402_v19 = vmin.f32 %v2394_v12, %v2401_v16  ;;  %v2407_v22 = vsel %vm2374_vm11, %v2289_v44, inf }
 0x2d2   : > { %v2404_v43 = vmin.f32 %v2396_v17, %v2403_v20  ;;  %v2419_v36 = vsel %vm2374_vm11, %v2313_v50, inf  ;;  %v2421_v37 = vsel %vm2374_vm11, %v2317_v51, inf  ;;  %v2423_v38 = vsel %vm2374_vm11, %v2321_v52, inf }
 0x2d3   : > { %v2406_v25 = vmin.f32 %v2398_v24, %v2405_v21  ;;  %v2408_v26 = vmin.f32 %v2400_v18, %v2407_v22  ;;  %v2410_v27 = vmin.f32 %v2402_v19, %v2409_v23  ;;  %v2425_v40 = vsel %vm2374_vm11, %v2325_v28, inf }
 0x2d4   : > { %v2412_v32 = vmin.f32 %v2404_v43, %v2411_v29  ;;  %v2427_v46 = vsel %vm2374_vm11, %v2329_v53, inf  ;;  %v2429_v47 = vsel %vm2374_vm11, %v2333_v54, inf  ;;  %v2431_v48 = vsel %vm2374_vm11, %v2337_v55, inf }
 0x2d5   : > { %v2414_v33 = vmin.f32 %v2406_v25, %v2413_v30  ;;  %v2416_v34 = vmin.f32 %v2408_v26, %v2415_v31  ;;  %v2418_v35 = vmin.f32 %v2410_v27, %v2417_v11  ;;  %v2433_v49 = vsel %vm2374_vm11, %v2341_v56, inf }
 0x2d6   : > { %v2420_v41 = vmin.f32 %v2412_v32, %v2419_v36 }
 0x2d7   : > { %v2422_v42 = vmin.f32 %v2414_v33, %v2421_v37  ;;  %v2424_v44 = vmin.f32 %v2416_v34, %v2423_v38  ;;  %v2426_v45 = vmin.f32 %v2418_v35, %v2425_v40 }
 0x2d8   : > { %v2428_v39 = vmin.f32 %v2420_v41, %v2427_v46 }
 0x2d9   : > { %v2430_v50 = vmin.f32 %v2422_v42, %v2429_v47  ;;  %v2432_v57 = vmin.f32 %v2424_v44, %v2431_v48  ;;  %v2434_v51 = vmin.f32 %v2426_v45, %v2433_v49 }
 0x2db   : > { %v2435_v58 = vmin.f32 %v2428_v39, %v2430_v50  ;;  %v2436_v52 = vmin.f32 %v2432_v57, %v2434_v51 }
 0x2dd   : > { %v2437_v59 = vmin.f32 %v2435_v58, %v2436_v52 }
 0x2df   : > { %2438 = vmin.xlane.f32.xlu0 %v2437_v59 }
 0x36c   : > { %v2439_v28 = vpop.xlane.xlu0 %2438 }
 0x36d   : > { %2441 = vst.msk [vmem:[#allocation9] sm:$0x1] %vm2440_vm12, %v2439_v28 }
 0x36e PF: > { %s3682_s12 = sadd.s32 4294967295, %s2934_s14   ;;  %s2946_s22 = smov [#allocation9]  }
 0x36f   : > { %p3615_p11 = scmp.eq.s32.totalorder %s3682_s12, 9  ;;  %s2451_s6 = sshll.u32 %s2946_s22, 4  ;;  %s2452_s6 = int_to_ptr.vmem [resolvable:$true] %s2451_s6 }
 0x370   : > { %s2850_s7 = scalar_lea.vmem %s2452_s6, 16  ;;  %s2856_s8 = scalar_lea.vmem %s2452_s6, 32 }
 0x371   : > { %p2851_p0 = scmp.ne.s32.totalorder %s2452_s6, %s2850_s7  ;;  %p2857_p9 = scmp.lt.s32.totalorder %s2452_s6, %s2452_s6 }
 0x372   : > { %p2858_p10 = scmp.lt.s32.totalorder %s2856_s8, %s2850_s7 }
 0x373   : > { %p2852_p4 = pnand %p2851_p0, %p3615_p11 }
 0x374   : > { %p2859_p13 = por %p2858_p10, %p2857_p9 }
 0x375   : > { %p2853_p7 = pneg %p2852_p4 }
 0x377   : > { %p2860_p1 = pnand %p2859_p13, %p2853_p7 }
 0x379   : > { %2863 = shalt.err (!%p2860_p1)
}
 0x37a   : > { %s2864_s28 = scalar_lea.hbm %s3661_s2, 16 }
 0x37b   : > { %p2865_p2 = scmp.ne.s32.totalorder %s3661_s2, %s2864_s28  ;;  %p2870_p3 = scmp.lt.u32.totalorder %s2864_s28, %s3661_s2 }
 0x37d   : > { %p2866_p5 = pnand %p2865_p2, %p3615_p11 }
 0x37f   : > { %p2867_p12 = pneg %p2866_p5 }
 0x381   : > { %p2872_p6 = pnand %p2870_p3, %p2867_p12 }
 0x383   : > { %2875 = shalt.err (!%p2872_p6)
}
 0x384   : > { %2731 = dma.vmem_to_hbm [thread:$0]  (%p3615_p11), %s2452_s6, 16, %s3661_s2, [#allocation6]  }
 0x385   : > { %2909 = dma.done.wait (%p3615_p11), [#allocation6], 16  }
 0x386   : > { %2911 = vsyncadd (%p3615_p11), [#allocation6], 4294967280 }
 0x387 PF: > { %s17_s14 = sadd.s32 1, %s2934_s14   ;;  %s3684_s9 = smov %s2918_s10 }
 0x388   : > { %p14_p8 = scmp.ge.s32.totalorder %s17_s14, 12   ;;  %s3685_s10 = smov %s2922_s11 }
 0x389   : > { %s3686_s11 = smov %s3050_s26  ;;  %s3687_s12 = smov %s2930_s13 }
 0x38a   : > { %s3688_s13 = smov %s3690_s21  ;;  %16 = sbr.rel (!%p14_p8) target bundleno = 9 (0x9), region = 79 }
 0x391   :  { %2464 = vsyncpa [#allocation5], 1 }
 0x392   :  { %2466 = vsyncpa [#allocation5 + $0x1], 1 }
 0x393   :  { %2467 = vsyncpa [#allocation6], 1 }
 0x394   :  { %2469 = vsyncpa [#allocation6 + $0x1], 1 }
 0x395   :  { %2470 = vsyncpa [#allocation7], 1 }
 0x396   :  { %2472 = vsyncpa [#allocation7 + $0x1], 1 }

</bundles_post_ra>
